<compile_context>
chip_gen: v5e
topology: v5e:2x2
jax: 0.10.0
libtpu: 0.0.40
codegen_flags: <defaults>
</compile_context>

<pallas_src>
import jax
import jax.numpy as jnp
from jax.experimental import pallas as pl
from jax.experimental.pallas import tpu as pltpu
import numpy as np


def _round_up(x, m):
    return (x + m - 1) // m * m


# --------------------------------------------------------------------------------------
# Kernel A: segment scatter-sum  (entity_agg)
#   grid = (entity_tiles, edge_blocks);  edges pre-sorted by head in the wrapper.
# --------------------------------------------------------------------------------------
def _scatter_kernel(blk_lo_ref, blk_hi_ref,        # scalar-prefetch (SMEM): per-tile block range
                    head_ref, msg_ref,             # VMEM inputs: (1, TE) int32, (TE, C) f32
                    out_ref,                       # (TM, C) f32
                    acc_ref):                      # VMEM scratch (TM, C) f32
    i = pl.program_id(0)                           # entity tile
    j = pl.program_id(1)                           # edge block (reduction axis)

    @pl.when(j == 0)
    def _init():
        acc_ref[...] = jnp.zeros_like(acc_ref)

    @pl.when(jnp.logical_and(j >= blk_lo_ref[i], j < blk_hi_ref[i]))
    def _accumulate():
        tm = acc_ref.shape[0]
        te = head_ref.shape[1]
        head_blk = head_ref[...]                                       # (1, TE) int32
        # local one-hot: rows = entity ids of this tile, cols = edges of this block
        row_ids = jax.lax.broadcasted_iota(jnp.int32, (tm, te), 0) + i * tm
        onehot = (row_ids == head_blk).astype(jnp.float32).astype(jnp.bfloat16)  # exact 0/1
        m = msg_ref[...]                                               # (TE, C) f32
        m_hi = m.astype(jnp.bfloat16)
        m_lo = (m - m_hi.astype(jnp.float32)).astype(jnp.bfloat16)     # f32 split -> 2 MXU passes
        acc_ref[...] += (
            jnp.dot(onehot, m_hi, preferred_element_type=jnp.float32)
            + jnp.dot(onehot, m_lo, preferred_element_type=jnp.float32))

    @pl.when(j == pl.num_programs(1) - 1)
    def _finalize():
        out_ref[...] = acc_ref[...]


# --------------------------------------------------------------------------------------
# Kernel B: user aggregate  user_agg = interact_mat @ entity_emb  (tiled matmul)
# --------------------------------------------------------------------------------------
def _user_agg_kernel(inter_ref,                    # (TU, TK) bf16
                     ent_ref,                      # (TK, C) f32
                     out_ref,                      # (TU, C) f32
                     acc_ref):                     # VMEM scratch (TU, C) f32
    k = pl.program_id(1)

    @pl.when(k == 0)
    def _init():
        acc_ref[...] = jnp.zeros_like(acc_ref)

    e = ent_ref[...]
    e_hi = e.astype(jnp.bfloat16)
    e_lo = (e - e_hi.astype(jnp.float32)).astype(jnp.bfloat16)
    w = inter_ref[...]
    acc_ref[...] += (
        jnp.dot(w, e_hi, preferred_element_type=jnp.float32)
        + jnp.dot(w, e_lo, preferred_element_type=jnp.float32))

    @pl.when(k == pl.num_programs(1) - 1)
    def _finalize():
        out_ref[...] = acc_ref[...]


# --------------------------------------------------------------------------------------
# Wrapper: Aggregator.forward
# --------------------------------------------------------------------------------------
def aggregator_forward(entity_emb, weight, edge_index, edge_type, unmask,
                       interact_mat_dense, *, tm=256, te=256, tu=256, tk=256):
    """entity_emb: (N_ent, 64) f32; weight: (R, 64) f32; edge_index: (2, E) int;
       edge_type: (E,) int (1-indexed); unmask: (E,) f32; interact_mat_dense: (N_usr, N_ent)."""
    n_entities, channel = entity_emb.shape
    n_users = interact_mat_dense.shape[0]
    n_edges = int(edge_type.shape[0])

    entity_emb = entity_emb.astype(jnp.float32)
    weight = weight.astype(jnp.float32)
    unmask = unmask.astype(jnp.float32)
    head = edge_index[0].astype(jnp.int32)
    tail = edge_index[1].astype(jnp.int32)
    etype = edge_type.astype(jnp.int32)

    # ---- per-edge message (O(E*C) XLA gathers; relation table is tiny) ----------------
    rel_u = weight[etype - 1] * unmask[:, None]            # (E, C)
    msg = entity_emb[tail] * rel_u                         # (E, C) f32

    # ---- sort edges by destination node (head) -> contiguous segments -----------------
    order = jnp.argsort(head)
    head_s = head[order]
    msg_s = msg[order]

    n_ent_pad = _round_up(n_entities, tm)
    e_pad = _round_up(n_edges, te)
    nb = e_pad // te
    nt = n_ent_pad // tm

    pad_e = e_pad - n_edges
    head_s = jnp.concatenate(
        [head_s, jnp.full((pad_e,), n_ent_pad, jnp.int32)])          # sentinel: never matches
    msg_s = jnp.concatenate(
        [msg_s, jnp.zeros((pad_e, channel), jnp.float32)])

    # ---- per-entity-tile edge-block range (scalar prefetch -> SMEM) -------------------
    tile_starts = jnp.arange(nt, dtype=jnp.int32) * tm
    e_lo = jnp.searchsorted(head_s, tile_starts, side="left").astype(jnp.int32)
    e_hi = jnp.searchsorted(head_s, tile_starts + tm, side="left").astype(jnp.int32)
    blk_lo = (e_lo // te).astype(jnp.int32)
    blk_hi = ((e_hi + te - 1) // te).astype(jnp.int32)

    head2d = head_s.reshape(1, e_pad)                                 # lane-dense indices

    def _clamped_block(j, lo_ref, hi_ref, i):
        jb = jnp.clip(jnp.clip(j, lo_ref[i], hi_ref[i] - 1), 0, nb - 1)
        return jb

    def head_map(i, j, lo_ref, hi_ref):
        return (0, _clamped_block(j, lo_ref, hi_ref, i))

    def msg_map(i, j, lo_ref, hi_ref):
        return (_clamped_block(j, lo_ref, hi_ref, i), 0)

    entity_agg = pl.pallas_call(
        _scatter_kernel,
        out_shape=jax.ShapeDtypeStruct((n_ent_pad, channel), jnp.float32),
        grid_spec=pltpu.PrefetchScalarGridSpec(
            num_scalar_prefetch=2,
            grid=(nt, nb),
            in_specs=[pl.BlockSpec((1, te), head_map),
                      pl.BlockSpec((te, channel), msg_map)],
            out_specs=pl.BlockSpec((tm, channel), lambda i, j, lo, hi: (i, 0)),
            scratch_shapes=[pltpu.VMEM((tm, channel), jnp.float32)]),
        compiler_params=pltpu.CompilerParams(
            dimension_semantics=("parallel", "arbitrary")),
    )(blk_lo, blk_hi, head2d, msg_s)
    entity_agg = entity_agg[:n_entities]

    # ---- user aggregate: tiled dense matmul (interact streamed as bf16) ---------------
    nu_pad = _round_up(n_users, tu)
    nk_pad = _round_up(n_entities, tk)
    inter = jnp.zeros((nu_pad, nk_pad), jnp.bfloat16)
    inter = inter.at[:n_users, :n_entities].set(interact_mat_dense.astype(jnp.bfloat16))
    ent_p = jnp.zeros((nk_pad, channel), jnp.float32).at[:n_entities].set(entity_emb)

    user_agg = pl.pallas_call(
        _user_agg_kernel,
        out_shape=jax.ShapeDtypeStruct((nu_pad, channel), jnp.float32),
        grid=(nu_pad // tu, nk_pad // tk),
        in_specs=[pl.BlockSpec((tu, tk), lambda i, k: (i, k)),
                  pl.BlockSpec((tk, channel), lambda i, k: (k, 0))],
        out_specs=pl.BlockSpec((tu, channel), lambda i, k: (i, 0)),
        scratch_shapes=[pltpu.VMEM((tu, channel), jnp.float32)],
        compiler_params=pltpu.CompilerParams(
            dimension_semantics=("parallel", "arbitrary")),
    )(inter, ent_p)
    user_agg = user_agg[:n_users]

    return entity_agg, user_agg


# --------------------------------------------------------------------------------------
# float64 numpy reference (ground truth for the scatter + sparse-mm semantics)
# --------------------------------------------------------------------------------------
def _reference_np(entity_emb, weight, edge_index, edge_type, unmask, interact_dense):
    ent = np.asarray(entity_emb, np.float64)
    w = np.asarray(weight, np.float64)
    head = np.asarray(edge_index[0])
    tail = np.asarray(edge_index[1])
    et = np.asarray(edge_type)
    um = np.asarray(unmask, np.float64)

    rel = w[et - 1]
    neigh = ent[tail] * um[:, None] * rel
    entity_agg = np.zeros_like(ent)
    np.add.at(entity_agg, head, neigh)
    user_agg = np.asarray(interact_dense, np.float64) @ ent
    return entity_agg, user_agg


if __name__ == "__main__":
    key = jax.random.PRNGKey(0)
    ks = jax.random.split(key, 8)

    # small but multi-tile shapes (channel fixed at 64 by the module)
    n_entities, channel = 640, 64
    n_users, n_edges, n_relations = 512, 4096, 6

    entity_emb = jax.random.normal(ks[0], (n_entities, channel), jnp.float32)
    weight = jax.random.normal(ks[1], (n_relations, channel), jnp.float32)
    head = jax.random.randint(ks[2], (n_edges,), 0, n_entities, jnp.int32)
    tail = jax.random.randint(ks[3], (n_edges,), 0, n_entities, jnp.int32)
    edge_index = jnp.stack([head, tail], axis=0)                        # (2, E)
    edge_type = jax.random.randint(ks[4], (n_edges,), 1, n_relations + 1, jnp.int32)
    unmask = jax.random.uniform(ks[5], (n_edges,), jnp.float32)
    # binary user-item interaction matrix (stand-in for the sparse interact_mat)
    interact_dense = jax.random.bernoulli(ks[6], 0.05, (n_users, n_entities)).astype(jnp.float32)

    entity_agg, user_agg = aggregator_forward(
        entity_emb, weight, edge_index, edge_type, unmask, interact_dense)
    jax.block_until_ready((entity_agg, user_agg))

    ref_ent, ref_usr = _reference_np(
        entity_emb, weight, edge_index, edge_type, unmask, interact_dense)
    np.testing.assert_allclose(np.asarray(entity_agg), ref_ent, rtol=1e-3, atol=2e-3)
    np.testing.assert_allclose(np.asarray(user_agg), ref_usr, rtol=1e-3, atol=2e-3)

    print("KERNEL_OK")
</pallas_src>

<mosaic_0001>
module attributes {stable_mosaic.version = 11 : i64} {
  func.func @_scatter_kernel(%arg0: i32, %arg1: i32, %arg2: memref<3xi32, #tpu.memory_space<smem>>, %arg3: memref<3xi32, #tpu.memory_space<smem>>, %arg4: memref<1x256xi32, #tpu.memory_space<vmem>>, %arg5: memref<256x64xf32, #tpu.memory_space<vmem>>, %arg6: memref<256x64xf32, #tpu.memory_space<vmem>>, %arg7: memref<256x64xf32, #tpu.memory_space<vmem>>) attributes {dimension_semantics = [#tpu.dimension_semantics<parallel>, #tpu.dimension_semantics<arbitrary>], iteration_bounds = array<i64: 3, 16>, scalar_prefetch = 2 : i64, scratch_operands = 1 : i64, tpu.core_type = #tpu.core_type<tc>, window_params = [{transform_indices = @transform_0, window_bounds = array<i64: 1, 256>}, {transform_indices = @transform_1, window_bounds = array<i64: 256, 64>}, {transform_indices = @transform_2, window_bounds = array<i64: 256, 64>}]} {
    %c0_i32 = arith.constant 0 : i32
    %0 = arith.cmpi eq, %arg1, %c0_i32 : i32
    %1 = arith.extui %0 : i1 to i32
    %c0_i32_0 = arith.constant 0 : i32
    %2 = arith.cmpi ne, %1, %c0_i32_0 : i32
    scf.if %2 {
      %cst = arith.constant 0.000000e+00 : f32
      %15 = vector.broadcast %cst : f32 to vector<256x64xf32>
      %c0 = arith.constant 0 : index
      %c0_3 = arith.constant 0 : index
      %16 = vector.load %arg7[%c0, %c0_3] : memref<256x64xf32, #tpu.memory_space<vmem>>, vector<256x64xf32>
      tpu.vector_store %arg7[%c0, %c0_3], %15 {strides = array<i32>} : memref<256x64xf32, #tpu.memory_space<vmem>>, vector<256x64xf32>,
    } else {
    }
    %3 = arith.index_cast %arg0 : i32 to index
    %4 = memref.load %arg2[%3] : memref<3xi32, #tpu.memory_space<smem>>
    %5 = arith.cmpi sge, %arg1, %4 : i32
    %6 = arith.index_cast %arg0 : i32 to index
    %7 = memref.load %arg3[%6] : memref<3xi32, #tpu.memory_space<smem>>
    %8 = arith.cmpi slt, %arg1, %7 : i32
    %9 = arith.andi %5, %8 : i1
    %10 = arith.extui %9 : i1 to i32
    %c0_i32_1 = arith.constant 0 : i32
    %11 = arith.cmpi ne, %10, %c0_i32_1 : i32
    scf.if %11 {
      %c0 = arith.constant 0 : index
      %c0_3 = arith.constant 0 : index
      %15 = vector.load %arg4[%c0, %c0_3] : memref<1x256xi32, #tpu.memory_space<vmem>>, vector<1x256xi32>
      %16 = tpu.iota {dimensions = array<i32: 0>} : vector<256x256xi32>
      %c256_i32 = arith.constant 256 : i32
      %17 = arith.muli %arg0, %c256_i32 : i32
      %18 = vector.broadcast %17 : i32 to vector<256x256xi32>
      %19 = arith.addi %16, %18 : vector<256x256xi32>
      %20 = vector.broadcast %15 : vector<1x256xi32> to vector<256x256xi32>
      %21 = arith.cmpi eq, %19, %20 : vector<256x256xi32>
      %22 = arith.extui %21 : vector<256x256xi1> to vector<256x256xi32>
      %23 = arith.sitofp %22 : vector<256x256xi32> to vector<256x256xf32>
      %24 = arith.truncf %23 : vector<256x256xf32> to vector<256x256xbf16>
      %c0_4 = arith.constant 0 : index
      %c0_5 = arith.constant 0 : index
      %25 = vector.load %arg5[%c0_4, %c0_5] : memref<256x64xf32, #tpu.memory_space<vmem>>, vector<256x64xf32>
      %26 = arith.truncf %25 : vector<256x64xf32> to vector<256x64xbf16>
      %27 = arith.extf %26 : vector<256x64xbf16> to vector<256x64xf32>
      %28 = arith.subf %25, %27 : vector<256x64xf32>
      %29 = arith.truncf %28 : vector<256x64xf32> to vector<256x64xbf16>
      %c0_6 = arith.constant 0 : index
      %c0_7 = arith.constant 0 : index
      %30 = vector.load %arg7[%c0_6, %c0_7] : memref<256x64xf32, #tpu.memory_space<vmem>>, vector<256x64xf32>
      %cst = arith.constant dense<0.000000e+00> : vector<256x64xf32>
      %31 = tpu.matmul %24, %26, %cst {dimension_numbers = #tpu.dot_dimension_numbers<[1], [0], [0], [1], [0, 0, 1, 1], [], []>} : vector<256x256xbf16>, vector<256x64xbf16>, vector<256x64xf32> -> vector<256x64xf32>
      %cst_8 = arith.constant dense<0.000000e+00> : vector<256x64xf32>
      %32 = tpu.matmul %24, %29, %cst_8 {dimension_numbers = #tpu.dot_dimension_numbers<[1], [0], [0], [1], [0, 0, 1, 1], [], []>} : vector<256x256xbf16>, vector<256x64xbf16>, vector<256x64xf32> -> vector<256x64xf32>
      %33 = arith.addf %31, %32 : vector<256x64xf32>
      %34 = arith.addf %30, %33 : vector<256x64xf32>
      %c0_9 = arith.constant 0 : index
      %c0_10 = arith.constant 0 : index
      %35 = vector.load %arg7[%c0_9, %c0_10] : memref<256x64xf32, #tpu.memory_space<vmem>>, vector<256x64xf32>
      tpu.vector_store %arg7[%c0_9, %c0_10], %34 {strides = array<i32>} : memref<256x64xf32, #tpu.memory_space<vmem>>, vector<256x64xf32>,
    } else {
    }
    %c15_i32 = arith.constant 15 : i32
    %12 = arith.cmpi eq, %arg1, %c15_i32 : i32
    %13 = arith.extui %12 : i1 to i32
    %c0_i32_2 = arith.constant 0 : i32
    %14 = arith.cmpi ne, %13, %c0_i32_2 : i32
    scf.if %14 {
      %c0 = arith.constant 0 : index
      %c0_3 = arith.constant 0 : index
      %15 = vector.load %arg7[%c0, %c0_3] : memref<256x64xf32, #tpu.memory_space<vmem>>, vector<256x64xf32>
      %c0_4 = arith.constant 0 : index
      %c0_5 = arith.constant 0 : index
      %16 = vector.load %arg6[%c0_4, %c0_5] : memref<256x64xf32, #tpu.memory_space<vmem>>, vector<256x64xf32>
      tpu.vector_store %arg6[%c0_4, %c0_5], %15 {strides = array<i32>} : memref<256x64xf32, #tpu.memory_space<vmem>>, vector<256x64xf32>,
    } else {
    }
    return
  }
  func.func @transform_0(%arg0: i32, %arg1: i32, %arg2: memref<3xi32, #tpu.memory_space<smem>>, %arg3: memref<3xi32, #tpu.memory_space<smem>>) -> (i32, i32) {
    %0 = arith.index_cast %arg0 : i32 to index
    %1 = memref.load %arg2[%0] : memref<3xi32, #tpu.memory_space<smem>>
    %2 = arith.index_cast %arg0 : i32 to index
    %3 = memref.load %arg3[%2] : memref<3xi32, #tpu.memory_space<smem>>
    %c1_i32 = arith.constant 1 : i32
    %4 = arith.subi %3, %c1_i32 : i32
    %5 = arith.maxsi %1, %arg1 : i32
    %6 = arith.minsi %4, %5 : i32
    %c0_i32 = arith.constant 0 : i32
    %c15_i32 = arith.constant 15 : i32
    %7 = arith.maxsi %c0_i32, %6 : i32
    %8 = arith.minsi %c15_i32, %7 : i32
    %c0_i32_0 = arith.constant 0 : i32
    %c0_i32_1 = arith.constant 0 : i32
    return %c0_i32_0, %8 : i32, i32
  }
  func.func @transform_1(%arg0: i32, %arg1: i32, %arg2: memref<3xi32, #tpu.memory_space<smem>>, %arg3: memref<3xi32, #tpu.memory_space<smem>>) -> (i32, i32) {
    %0 = arith.index_cast %arg0 : i32 to index
    %1 = memref.load %arg2[%0] : memref<3xi32, #tpu.memory_space<smem>>
    %2 = arith.index_cast %arg0 : i32 to index
    %3 = memref.load %arg3[%2] : memref<3xi32, #tpu.memory_space<smem>>
    %c1_i32 = arith.constant 1 : i32
    %4 = arith.subi %3, %c1_i32 : i32
    %5 = arith.maxsi %1, %arg1 : i32
    %6 = arith.minsi %4, %5 : i32
    %c0_i32 = arith.constant 0 : i32
    %c15_i32 = arith.constant 15 : i32
    %7 = arith.maxsi %c0_i32, %6 : i32
    %8 = arith.minsi %c15_i32, %7 : i32
    %c0_i32_0 = arith.constant 0 : i32
    %c0_i32_1 = arith.constant 0 : i32
    return %8, %c0_i32_0 : i32, i32
  }
  func.func @transform_2(%arg0: i32, %arg1: i32, %arg2: memref<3xi32, #tpu.memory_space<smem>>, %arg3: memref<3xi32, #tpu.memory_space<smem>>) -> (i32, i32) {
    %c0_i32 = arith.constant 0 : i32
    %c0_i32_0 = arith.constant 0 : i32
    return %arg0, %c0_i32 : i32, i32
  }
}

</mosaic_0001>

<bundles_post_ra>
// kernel: tpu_custom_call.1
= control target key start
LH: loop header
LB: loop body
LE: loop exit
PB: predicated region body
PF: predicated region fallthrough
CT: control target
= control target key end

     0   :  { %s1890_s21 = smov [#allocation4]   ;;  %s1891_s22 = smov [#allocation5]   ;;  %s2372_s0 = inlined_call_operand.vmem [shape: s32[3], index: 0, kind: input, shape index: {}]   ;;  %s2373_s2 = inlined_call_operand.vmem [shape: s32[1,4096], index: 2, kind: input, shape index: {}]   ;;  %s2374_s3 = inlined_call_operand.vmem [shape: f32[4096,64], index: 3, kind: input, shape index: {}]   ;;  %s2375_s4 = inlined_call_operand.vmem [shape: f32[768,64], index: 4, kind: output, shape index: {}]   ;;  %s2376_s1 = inlined_call_operand.vmem [shape: s32[3], index: 1, kind: input, shape index: {}]  }
   0x1   :  { %s10_s17 = sshll.u32 %s2372_s0, 4  ;;  %s15_s20 = sshll.u32 %s2376_s1, 4  ;;  %s11_s17 = int_to_ptr.vmem [resolvable:$true] %s10_s17  ;;  %s16_s20 = int_to_ptr.vmem [resolvable:$true] %s15_s20 }
   0x2   :  { %13 = dma.vmem_to_smem %s11_s17, 16, %s1890_s21, [#allocation3] }
   0x3   :  { %18 = dma.vmem_to_smem %s16_s20, 16, %s1891_s22, [#allocation3] }
   0x4   :  { %1868 = dma.done.wait [#allocation3], 32 }
   0x5   :  { %1869 = vsyncadd [#allocation3], 4294967264 }
   0x6   :  { %21 = sfence }
   0x7   :  { %s1925_s23 = smov 0   ;;  %s1927_s24 = smov 0  }
   0x8   :  { %s1929_s25 = smov 0   ;;  %s1931_s0 = smov 0  }
   0x9   :  { %s1933_s26 = smov 0  }
   0xa LB: > { %s36_s1 = sadd.s32 1, %s1880_s25  ;;  %s39_s27 = sadd.s32 1, %s1884_s0  ;;  %s1888_s26 = sphi %s1933_s26, %s27_s26   ;;  %s1884_s0 = sphi %s1931_s0, %s2380_s0   ;;  %s1880_s25 = sphi %s1929_s25, %s2379_s25   ;;  %s1876_s24 = sphi %s1927_s24, %s2378_s24   ;;  %s1872_s23 = sphi %s1925_s23, %s2377_s23  }
   0xb   : > { %p37_p0 = scmp.ge.s32.totalorder %s36_s1, 16  ;;  %p1553_p1 = scmp.ge.s32.totalorder %s1888_s26, 1 }
   0xc   : > { %p238_p2 = scmp.lt.s32.totalorder %s1888_s26, 49 }
   0xd   : > { %s2382_s1 = smov (%p37_p0, %s36_s1), 0  ;;  %s2384_s27 = smov (!%p37_p0, %s39_s27), %s1884_s0 }
   0xe   : > { %p239_p3 = pnand %p1553_p1, %p238_p2  ;;  %p41_p4 = scmp.ge.s32.totalorder %s2384_s27, 3 }
   0xf   : > { %s286_s28 = sld [smem:[#allocation4 + %s1876_s24]] (!%p239_p3)  ;;  %s1569_s29 = sshll.u32 (!%p239_p3), %s1876_s24, 5 }
  0x10   : > { %s2386_s27 = smov (%p41_p4, %s2384_s27), 0  ;;  %242 = sbr.rel (%p239_p3) target bundleno = 565 (0x235), region = 28 }
  0x11   : > { %s287_s30 = sld [smem:[#allocation5 + %s1876_s24]] (!%p239_p3)  ;;  %p342_p5 = scmp.lt.s32.totalorder (!%p239_p3), %s1569_s29, 95 }
  0x12   : > { %s313_s5 = sld [smem:[#allocation4 + %s1876_s24]] (!%p239_p3)  ;;  %p1571_p2 = scmp.ne.s32.totalorder (!%p239_p3), %s1872_s23, 0 }
  0x13   : > { %s314_s6 = sld [smem:[#allocation5 + %s1876_s24]] (!%p239_p3) }
  0x15   : > { %s2388_s29 = smov (!%p342_p5, %s1569_s29), 95  ;;  %p289_p6 = scmp.gt.s32.totalorder %s286_s28, %s1872_s23 }
  0x16   : > { %s1570_s7 = sshll.u32 %s2388_s29, 3 }
  0x17   : > { %s1554_s8 = sadd.s32 4294967295, %s287_s30  ;;  %s1968_s11 = scalar_lea.vmem %s2375_s4, %s1570_s7 }
  0x18   : > { %s2390_s28 = smov (!%p289_p6, %s286_s28), %s1872_s23  ;;  %p316_p7 = scmp.gt.s32.totalorder %s313_s5, %s1872_s23 }
  0x19   : > { %p291_p8 = scmp.lt.s32.totalorder %s1554_s8, %s2390_s28  ;;  %s1561_s12 = sadd.s32 4294967295, %s314_s6 }
  0x1a   : > { %s2392_s5 = smov (!%p316_p7, %s313_s5), %s1872_s23 }
  0x1b   : > { %s2394_s8 = smov (!%p291_p8, %s1554_s8), %s2390_s28  ;;  %p318_p9 = scmp.lt.s32.totalorder %s1561_s12, %s2392_s5 }
  0x1c   : > { %p293_p10 = scmp.gt.s32.totalorder %s2394_s8, 0  ;;  %p1555_p11 = scmp.lt.s32.totalorder %s2394_s8, 15 }
  0x1d   : > { %s2396_s12 = smov (!%p318_p9, %s1561_s12), %s2392_s5 }
  0x1e   : > { %s2398_s8 = smov (!%p293_p10, %s2394_s8), 0  ;;  %p320_p12 = scmp.gt.s32.totalorder %s2396_s12, 0 }
  0x1f   : > { %p1562_p13 = scmp.lt.s32.totalorder %s2396_s12, 15  ;;  %s2400_s8 = smov (!%p1555_p11, %s2398_s8), 15 }
  0x20   : > { %s2402_s12 = smov (!%p320_p12, %s2396_s12), 0  ;;  %s1560_s13 = sshll.u32 %s2400_s8, 1 }
  0x21   : > { %p298_p0 = scmp.lt.s32.totalorder %s1560_s13, 31  ;;  %s2404_s12 = smov (!%p1562_p13, %s2402_s12), 15 }
  0x22   : > { %s1567_s14 = sshll.u32 %s2404_s12, 5 }
  0x23   : > { %s2406_s13 = smov (!%p298_p0, %s1560_s13), 31  ;;  %p325_p1 = scmp.lt.s32.totalorder %s1567_s14, 511 }
  0x24   : > { %s300_s17 = scalar_lea.vmem %s2373_s2, %s2406_s13  ;;  %350 = sbr.rel (%p1571_p2) target bundleno = 74 (0x4a), region = 32 }
  0x25   : > { %s2408_s14 = smov (!%p325_p1, %s1567_s14), 511 }
  0x26   : > { %s1568_s18 = sshll.u32 %s2408_s14, 3 }
  0x27   : > { %s1982_s21 = scalar_lea.vmem %s2374_s3, %s1568_s18 }
  0x29   : > { %vm351_vm0 = vcmask 523264   ;;  %v1892_v0 = vmov 0.0  }
  0x2a   : > { %352 = vst.msk [vmem:[#allocation2] sm:$0xff] %vm351_vm0, %v1892_v0 }
  0x2b   : > { %353 = vst.msk [vmem:[#allocation2 + $0x8] sm:$0xff] %vm351_vm0, %v1892_v0 }
  0x2c   : > { %354 = vst.msk [vmem:[#allocation2 + $0x10] sm:$0xff] %vm351_vm0, %v1892_v0 }
  0x2d   : > { %355 = vst.msk [vmem:[#allocation2 + $0x18] sm:$0xff] %vm351_vm0, %v1892_v0 }
  0x2e   : > { %356 = vst.msk [vmem:[#allocation2 + $0x20] sm:$0xff] %vm351_vm0, %v1892_v0 }
  0x2f   : > { %357 = vst.msk [vmem:[#allocation2 + $0x28] sm:$0xff] %vm351_vm0, %v1892_v0 }
  0x30   : > { %358 = vst.msk [vmem:[#allocation2 + $0x30] sm:$0xff] %vm351_vm0, %v1892_v0 }
  0x31   : > { %359 = vst.msk [vmem:[#allocation2 + $0x38] sm:$0xff] %vm351_vm0, %v1892_v0 }
  0x32   : > { %360 = vst.msk [vmem:[#allocation2 + $0x40] sm:$0xff] %vm351_vm0, %v1892_v0 }
  0x33   : > { %361 = vst.msk [vmem:[#allocation2 + $0x48] sm:$0xff] %vm351_vm0, %v1892_v0 }
  0x34   : > { %362 = vst.msk [vmem:[#allocation2 + $0x50] sm:$0xff] %vm351_vm0, %v1892_v0 }
  0x35   : > { %363 = vst.msk [vmem:[#allocation2 + $0x58] sm:$0xff] %vm351_vm0, %v1892_v0 }
  0x36   : > { %364 = vst.msk [vmem:[#allocation2 + $0x60] sm:$0xff] %vm351_vm0, %v1892_v0 }
  0x37   : > { %365 = vst.msk [vmem:[#allocation2 + $0x68] sm:$0xff] %vm351_vm0, %v1892_v0 }
  0x38   : > { %366 = vst.msk [vmem:[#allocation2 + $0x70] sm:$0xff] %vm351_vm0, %v1892_v0 }
  0x39   : > { %367 = vst.msk [vmem:[#allocation2 + $0x78] sm:$0xff] %vm351_vm0, %v1892_v0 }
  0x3a   : > { %368 = vst.msk [vmem:[#allocation2 + $0x80] sm:$0xff] %vm351_vm0, %v1892_v0 }
  0x3b   : > { %369 = vst.msk [vmem:[#allocation2 + $0x88] sm:$0xff] %vm351_vm0, %v1892_v0 }
  0x3c   : > { %370 = vst.msk [vmem:[#allocation2 + $0x90] sm:$0xff] %vm351_vm0, %v1892_v0 }
  0x3d   : > { %371 = vst.msk [vmem:[#allocation2 + $0x98] sm:$0xff] %vm351_vm0, %v1892_v0 }
  0x3e   : > { %372 = vst.msk [vmem:[#allocation2 + $0xa0] sm:$0xff] %vm351_vm0, %v1892_v0 }
  0x3f   : > { %373 = vst.msk [vmem:[#allocation2 + $0xa8] sm:$0xff] %vm351_vm0, %v1892_v0 }
  0x40   : > { %374 = vst.msk [vmem:[#allocation2 + $0xb0] sm:$0xff] %vm351_vm0, %v1892_v0 }
  0x41   : > { %375 = vst.msk [vmem:[#allocation2 + $0xb8] sm:$0xff] %vm351_vm0, %v1892_v0 }
  0x42   : > { %376 = vst.msk [vmem:[#allocation2 + $0xc0] sm:$0xff] %vm351_vm0, %v1892_v0 }
  0x43   : > { %377 = vst.msk [vmem:[#allocation2 + $0xc8] sm:$0xff] %vm351_vm0, %v1892_v0 }
  0x44   : > { %378 = vst.msk [vmem:[#allocation2 + $0xd0] sm:$0xff] %vm351_vm0, %v1892_v0 }
  0x45   : > { %379 = vst.msk [vmem:[#allocation2 + $0xd8] sm:$0xff] %vm351_vm0, %v1892_v0 }
  0x46   : > { %380 = vst.msk [vmem:[#allocation2 + $0xe0] sm:$0xff] %vm351_vm0, %v1892_v0 }
  0x47   : > { %381 = vst.msk [vmem:[#allocation2 + $0xe8] sm:$0xff] %vm351_vm0, %v1892_v0 }
  0x48   : > { %382 = vst.msk [vmem:[#allocation2 + $0xf0] sm:$0xff] %vm351_vm0, %v1892_v0 }
  0x49   : > { %383 = vst.msk [vmem:[#allocation2 + $0xf8] sm:$0xff] %vm351_vm0, %v1892_v0 }
  0x4a PF: > { %s384_s22 = sld [smem:[#allocation4 + %s1876_s24]] }
  0x4b   : > { %s386_s28 = sld [smem:[#allocation5 + %s1876_s24]] }
  0x50   : > { %p385_p3 = scmp.ge.s32.totalorder %s1872_s23, %s384_s22 }
  0x51   : > { %p387_p4 = scmp.lt.s32.totalorder %s1872_s23, %s386_s28 }
  0x53   : > { %p388_p5 = pnand %p387_p4, %p385_p3 }
  0x54   : > { %s1572_s29 = sshll.u32 (!%p388_p5), %s1876_s24, 8 }
  0x55   : > { %391 = sbr.rel (%p388_p5) target bundleno = 525 (0x20d), region = 36 }
  0x5a   : > { %v700_v1 = vld [vmem:[%s1982_s21 + $0x70] sm:$0xff]  ;;  %v701_v2 = vld [vmem:[%s1982_s21 + $0x78] sm:$0xff]  ;;  %v698_v8 = vld [vmem:[%s1982_s21 + $0x60] sm:$0xff] }
  0x5b   : > { %v716_v3 = vld [vmem:[%s1982_s21 + $0xf0] sm:$0xff]  ;;  %v732_v4 = vpack.c.bf16 %v700_v1, %v700_v1  ;;  %v733_v5 = vpack.c.bf16 %v701_v2, %v701_v2  ;;  %v717_v6 = vld [vmem:[%s1982_s21 + $0xf8] sm:$0xff]  ;;  %v699_v9 = vld [vmem:[%s1982_s21 + $0x68] sm:$0xff]  ;;  %v730_v11 = vpack.c.bf16 %v698_v8, %v698_v8 }
  0x5c   : > { %v748_v7 = vpack.c.bf16 %v716_v3, %v716_v3  ;;  %v749_v10 = vpack.c.bf16 %v717_v6, %v717_v6  ;;  %v731_v12 = vpack.c.bf16 %v699_v9, %v699_v9  ;;  %v714_v21 = vld [vmem:[%s1982_s21 + $0xe0] sm:$0xff]  ;;  %v715_v22 = vld [vmem:[%s1982_s21 + $0xe8] sm:$0xff]  ;;  %v696_v27 = vld [vmem:[%s1982_s21 + $0x50] sm:$0xff] }
  0x5d   : > { %v1086_v13 = vunpack.c.l.b16 %v732_v4  ;;  %v1087_v14 = vunpack.c.l.b16 %v733_v5  ;;  %v764_v16 = vunpack.c.l.bf16 %v732_v4  ;;  %v765_v18 = vunpack.c.l.bf16 %v733_v5  ;;  %v697_v36 = vld [vmem:[%s1982_s21 + $0x58] sm:$0xff]  ;;  %v712_v41 = vld [vmem:[%s1982_s21 + $0xd0] sm:$0xff]  ;;  %v694_v59 = vld [vmem:[%s1982_s21 + $0x40] sm:$0xff] }
  0x5e   : > { %v1102_v15 = vunpack.c.l.b16 %v748_v7  ;;  %v1103_v17 = vunpack.c.l.b16 %v749_v10  ;;  %v780_v19 = vunpack.c.l.bf16 %v748_v7  ;;  %v781_v20 = vunpack.c.l.bf16 %v749_v10  ;;  %v713_v42 = vld [vmem:[%s1982_s21 + $0xd8] sm:$0xff]  ;;  %v695_v0 = vld [vmem:[%s1982_s21 + $0x48] sm:$0xff] }
  0x5f   : > { %v1111_v23 = vpack.c.b16 %v1087_v14, %v1086_v13  ;;  %v796_v24 = vsub.f32 %v700_v1, %v764_v16  ;;  %v1084_v25 = vunpack.c.l.b16 %v730_v11  ;;  %v1085_v26 = vunpack.c.l.b16 %v731_v12  ;;  %v710_v1 = vld [vmem:[%s1982_s21 + $0xc0] sm:$0xff] }
  0x60   : > { %v1119_v28 = vpack.c.b16 %v1103_v17, %v1102_v15  ;;  %v797_v29 = vsub.f32 %v701_v2, %v765_v18  ;;  %v812_v30 = vsub.f32 %v716_v3, %v780_v19  ;;  %v813_v31 = vsub.f32 %v717_v6, %v781_v20  ;;  %v711_v6 = vld [vmem:[%s1982_s21 + $0xc8] sm:$0xff]  ;;  %v692_v19 = vld [vmem:[%s1982_s21 + $0x30] sm:$0xff]  ;;  %v693_v20 = vld [vmem:[%s1982_s21 + $0x38] sm:$0xff] }
  0x61   : > { %1136 = vmatpush.bf16.msra.mxu2 %v1111_v23  ;;  %v1110_v32 = vpack.c.b16 %v1085_v26, %v1084_v25  ;;  %v746_v33 = vpack.c.bf16 %v714_v21, %v714_v21  ;;  %v747_v34 = vpack.c.bf16 %v715_v22, %v715_v22  ;;  %v762_v35 = vunpack.c.l.bf16 %v730_v11  ;;  %v708_v25 = vld [vmem:[%s1982_s21 + $0xb0] sm:$0xff] }
  0x62   : > { %1225 = vmatpush.bf16.msra.mxu3 %v1119_v28  ;;  %v821_v37 = vpack.c.bf16 %v797_v29, %v796_v24  ;;  %v829_v38 = vpack.c.bf16 %v813_v31, %v812_v30  ;;  %v763_v39 = vunpack.c.l.bf16 %v731_v12  ;;  %v728_v40 = vpack.c.bf16 %v696_v27, %v696_v27  ;;  %v709_v30 = vld [vmem:[%s1982_s21 + $0xb8] sm:$0xff] }
  0x63   : > { %v1100_v43 = vunpack.c.l.b16 %v746_v33  ;;  %v1101_v44 = vunpack.c.l.b16 %v747_v34  ;;  %v794_v45 = vsub.f32 %v698_v8, %v762_v35  ;;  %v778_v46 = vunpack.c.l.bf16 %v746_v33 }
  0x64   : > { %862 = vmatpush.bf16.msra.mxu0 %v821_v37  ;;  %951 = vmatpush.bf16.msra.mxu1 %v829_v38  ;;  %v795_v47 = vsub.f32 %v699_v9, %v763_v39  ;;  %v779_v48 = vunpack.c.l.bf16 %v747_v34  ;;  %v729_v49 = vpack.c.bf16 %v697_v36, %v697_v36  ;;  %v1082_v50 = vunpack.c.l.b16 %v728_v40 }
  0x65   : > { %1137 = vmatpush.bf16.msra.mxu2 %v1110_v32  ;;  %v1118_v51 = vpack.c.b16 %v1101_v44, %v1100_v43  ;;  %v810_v52 = vsub.f32 %v714_v21, %v778_v46  ;;  %v744_v53 = vpack.c.bf16 %v712_v41, %v712_v41  ;;  %v745_v54 = vpack.c.bf16 %v713_v42, %v713_v42  ;;  %v690_v43 = vld [vmem:[%s1982_s21 + $0x20] sm:$0xff]  ;;  %v691_v44 = vld [vmem:[%s1982_s21 + $0x28] sm:$0xff] }
  0x66   : > { %v820_v55 = vpack.c.bf16 %v795_v47, %v794_v45  ;;  %v811_v56 = vsub.f32 %v715_v22, %v779_v48  ;;  %v1083_v57 = vunpack.c.l.b16 %v729_v49  ;;  %v760_v58 = vunpack.c.l.bf16 %v728_v40 }
  0x67   : > { %1226 = vmatpush.bf16.msra.mxu3 %v1118_v51  ;;  %v1098_v60 = vunpack.c.l.b16 %v744_v53  ;;  %v1099_v61 = vunpack.c.l.b16 %v745_v54  ;;  %v761_v62 = vunpack.c.l.bf16 %v729_v49  ;;  %v776_v63 = vunpack.c.l.bf16 %v744_v53  ;;  %v706_v49 = vld [vmem:[%s1982_s21 + $0xa0] sm:$0xff] }
  0x68   : > { %863 = vmatpush.bf16.msra.mxu0 %v820_v55  ;;  %v828_v2 = vpack.c.bf16 %v811_v56, %v810_v52  ;;  %v1109_v3 = vpack.c.b16 %v1083_v57, %v1082_v50  ;;  %v792_v4 = vsub.f32 %v696_v27, %v760_v58  ;;  %v777_v5 = vunpack.c.l.bf16 %v745_v54  ;;  %v707_v54 = vld [vmem:[%s1982_s21 + $0xa8] sm:$0xff] }
  0x69   : > { %v1117_v7 = vpack.c.b16 %v1099_v61, %v1098_v60  ;;  %v793_v8 = vsub.f32 %v697_v36, %v761_v62  ;;  %v808_v9 = vsub.f32 %v712_v41, %v776_v63  ;;  %v726_v10 = vpack.c.bf16 %v694_v59, %v694_v59 }
  0x6a   : > { %952 = vmatpush.bf16.msra.mxu1 %v828_v2  ;;  %1138 = vmatpush.bf16.msra.mxu2 %v1109_v3  ;;  %v809_v11 = vsub.f32 %v713_v42, %v777_v5  ;;  %v727_v12 = vpack.c.bf16 %v695_v0, %v695_v0  ;;  %v742_v13 = vpack.c.bf16 %v710_v1, %v710_v1  ;;  %v393_v14 = vlaneseq  ;;  %v688_v3 = vld [vmem:[%s1982_s21 + $0x10] sm:$0xff] }
  0x6b   : > { %1227 = vmatpush.bf16.msra.mxu3 %v1117_v7  ;;  %v819_v15 = vpack.c.bf16 %v793_v8, %v792_v4  ;;  %v1080_v16 = vunpack.c.l.b16 %v726_v10  ;;  %v743_v17 = vpack.c.bf16 %v711_v6, %v711_v6  ;;  %v758_v18 = vunpack.c.l.bf16 %v726_v10  ;;  %v689_v4 = vld [vmem:[%s1982_s21 + $0x18] sm:$0xff] }
  0x6c   : > { %v827_v21 = vpack.c.bf16 %v809_v11, %v808_v9  ;;  %v1081_v22 = vunpack.c.l.b16 %v727_v12  ;;  %v1096_v23 = vunpack.c.l.b16 %v742_v13  ;;  %v759_v24 = vunpack.c.l.bf16 %v727_v12  ;;  %v704_v9 = vld [vmem:[%s1982_s21 + $0x90] sm:$0xff] }
  0x6d   : > { %864 = vmatpush.bf16.msra.mxu0 %v819_v15  ;;  %v1097_v26 = vunpack.c.l.b16 %v743_v17  ;;  %v790_v27 = vsub.f32 %v694_v59, %v758_v18  ;;  %v774_v28 = vunpack.c.l.bf16 %v742_v13  ;;  %v775_v29 = vunpack.c.l.bf16 %v743_v17  ;;  %v705_v15 = vld [vmem:[%s1982_s21 + $0x98] sm:$0xff] }
  0x6e   : > { %953 = vmatpush.bf16.msra.mxu1 %v827_v21  ;;  %v1108_v31 = vpack.c.b16 %v1081_v22, %v1080_v16  ;;  %v791_v32 = vsub.f32 %v695_v0, %v759_v24  ;;  %v724_v33 = vpack.c.bf16 %v692_v19, %v692_v19  ;;  %v725_v34 = vpack.c.bf16 %v693_v20, %v693_v20 }
  0x6f   : > { %v1116_v35 = vpack.c.b16 %v1097_v26, %v1096_v23  ;;  %v806_v36 = vsub.f32 %v710_v1, %v774_v28  ;;  %v807_v37 = vsub.f32 %v711_v6, %v775_v29  ;;  %v740_v38 = vpack.c.bf16 %v708_v25, %v708_v25  ;;  %v686_v28 = vld [vmem:[%s1982_s21] sm:$0xff]  ;;  %v687_v29 = vld [vmem:[%s1982_s21 + $0x8] sm:$0xff] }
  0x70   : > { %1139 = vmatpush.bf16.msra.mxu2 %v1108_v31  ;;  %v818_v39 = vpack.c.bf16 %v791_v32, %v790_v27  ;;  %v1078_v40 = vunpack.c.l.b16 %v724_v33  ;;  %v1079_v41 = vunpack.c.l.b16 %v725_v34  ;;  %v741_v42 = vpack.c.bf16 %v709_v30, %v709_v30 }
  0x71   : > { %1228 = vmatpush.bf16.msra.mxu3 %v1116_v35  ;;  %v826_v45 = vpack.c.bf16 %v807_v37, %v806_v36  ;;  %v1094_v46 = vunpack.c.l.b16 %v740_v38  ;;  %v756_v47 = vunpack.c.l.bf16 %v724_v33  ;;  %v757_v48 = vunpack.c.l.bf16 %v725_v34  ;;  %v702_v34 = vld [vmem:[%s1982_s21 + $0x80] sm:$0xff] }
  0x72   : > { %865 = vmatpush.bf16.msra.mxu0 %v818_v39  ;;  %v1107_v50 = vpack.c.b16 %v1079_v41, %v1078_v40  ;;  %v1095_v51 = vunpack.c.l.b16 %v741_v42  ;;  %v772_v52 = vunpack.c.l.bf16 %v740_v38  ;;  %v773_v53 = vunpack.c.l.bf16 %v741_v42  ;;  %v703_v39 = vld [vmem:[%s1982_s21 + $0x88] sm:$0xff] }
  0x73   : > { %954 = vmatpush.bf16.msra.mxu1 %v826_v45  ;;  %v788_v55 = vsub.f32 %v692_v19, %v756_v47  ;;  %v789_v56 = vsub.f32 %v693_v20, %v757_v48  ;;  %v722_v57 = vpack.c.bf16 %v690_v43, %v690_v43  ;;  %v723_v58 = vpack.c.bf16 %v691_v44, %v691_v44 }
  0x74   : > { %1140 = vmatpush.bf16.msra.mxu2 %v1107_v50  ;;  %v1115_v59 = vpack.c.b16 %v1095_v51, %v1094_v46  ;;  %v804_v60 = vsub.f32 %v708_v25, %v772_v52  ;;  %v805_v61 = vsub.f32 %v709_v30, %v773_v53  ;;  %v738_v62 = vpack.c.bf16 %v706_v49, %v706_v49 }
  0x75   : > { %v817_v63 = vpack.c.bf16 %v789_v56, %v788_v55  ;;  %v1076_v0 = vunpack.c.l.b16 %v722_v57  ;;  %v1077_v1 = vunpack.c.l.b16 %v723_v58  ;;  %v739_v2 = vpack.c.bf16 %v707_v54, %v707_v54  ;;  %v392_v56 = vld [vmem:[%s300_s17] sm:$0x3] }
  0x76   : > { %1229 = vmatpush.bf16.msra.mxu3 %v1115_v59  ;;  %v825_v5 = vpack.c.bf16 %v805_v61, %v804_v60  ;;  %v1092_v6 = vunpack.c.l.b16 %v738_v62  ;;  %v754_v7 = vunpack.c.l.bf16 %v722_v57  ;;  %v755_v8 = vunpack.c.l.bf16 %v723_v58 }
  0x77   : > { %866 = vmatpush.bf16.msra.mxu0 %v817_v63  ;;  %v1106_v10 = vpack.c.b16 %v1077_v1, %v1076_v0  ;;  %v1093_v11 = vunpack.c.l.b16 %v739_v2  ;;  %v770_v12 = vunpack.c.l.bf16 %v738_v62  ;;  %v771_v13 = vunpack.c.l.bf16 %v739_v2 }
  0x78   : > { %955 = vmatpush.bf16.msra.mxu1 %v825_v5  ;;  %v786_v16 = vsub.f32 %v690_v43, %v754_v7  ;;  %v787_v17 = vsub.f32 %v691_v44, %v755_v8  ;;  %v720_v18 = vpack.c.bf16 %v688_v3, %v688_v3  ;;  %v721_v19 = vpack.c.bf16 %v689_v4, %v689_v4 }
  0x79   : > { %1141 = vmatpush.bf16.msra.mxu2 %v1106_v10  ;;  %v1114_v20 = vpack.c.b16 %v1093_v11, %v1092_v6  ;;  %v802_v21 = vsub.f32 %v706_v49, %v770_v12  ;;  %v803_v22 = vsub.f32 %v707_v54, %v771_v13  ;;  %v736_v23 = vpack.c.bf16 %v704_v9, %v704_v9 }
  0x7a   : > { %v816_v24 = vpack.c.bf16 %v787_v17, %v786_v16  ;;  %v1074_v25 = vunpack.c.l.b16 %v720_v18  ;;  %v1075_v26 = vunpack.c.l.b16 %v721_v19  ;;  %v737_v27 = vpack.c.bf16 %v705_v15, %v705_v15 }
  0x7b   : > { %1230 = vmatpush.bf16.msra.mxu3 %v1114_v20  ;;  %v824_v30 = vpack.c.bf16 %v803_v22, %v802_v21  ;;  %v1090_v31 = vunpack.c.l.b16 %v736_v23  ;;  %v752_v32 = vunpack.c.l.bf16 %v720_v18  ;;  %v753_v33 = vunpack.c.l.bf16 %v721_v19 }
  0x7c   : > { %867 = vmatpush.bf16.msra.mxu0 %v816_v24  ;;  %v1105_v35 = vpack.c.b16 %v1075_v26, %v1074_v25  ;;  %v1091_v36 = vunpack.c.l.b16 %v737_v27  ;;  %v768_v37 = vunpack.c.l.bf16 %v736_v23  ;;  %v769_v38 = vunpack.c.l.bf16 %v737_v27 }
  0x7d   : > { %956 = vmatpush.bf16.msra.mxu1 %v824_v30  ;;  %v784_v40 = vsub.f32 %v688_v3, %v752_v32  ;;  %v785_v41 = vsub.f32 %v689_v4, %v753_v33  ;;  %v718_v42 = vpack.c.bf16 %v686_v28, %v686_v28  ;;  %v719_v43 = vpack.c.bf16 %v687_v29, %v687_v29 }
  0x7e   : > { %1142 = vmatpush.bf16.msra.mxu2 %v1105_v35  ;;  %v1113_v44 = vpack.c.b16 %v1091_v36, %v1090_v31  ;;  %v800_v45 = vsub.f32 %v704_v9, %v768_v37  ;;  %v801_v46 = vsub.f32 %v705_v15, %v769_v38  ;;  %v734_v47 = vpack.c.bf16 %v702_v34, %v702_v34 }
  0x7f   : > { %v815_v48 = vpack.c.bf16 %v785_v41, %v784_v40  ;;  %v1072_v49 = vunpack.c.l.b16 %v718_v42  ;;  %v1073_v50 = vunpack.c.l.b16 %v719_v43  ;;  %v735_v51 = vpack.c.bf16 %v703_v39, %v703_v39 }
  0x80   : > { %1231 = vmatpush.bf16.msra.mxu3 %v1113_v44  ;;  %v823_v52 = vpack.c.bf16 %v801_v46, %v800_v45  ;;  %v1088_v53 = vunpack.c.l.b16 %v734_v47  ;;  %v750_v54 = vunpack.c.l.bf16 %v718_v42  ;;  %v751_v55 = vunpack.c.l.bf16 %v719_v43 }
  0x81   : > { %868 = vmatpush.bf16.msra.mxu0 %v815_v48  ;;  %v1104_v57 = vpack.c.b16 %v1073_v50, %v1072_v49  ;;  %v1089_v58 = vunpack.c.l.b16 %v735_v51  ;;  %v766_v59 = vunpack.c.l.bf16 %v734_v47  ;;  %v767_v60 = vunpack.c.l.bf16 %v735_v51 }
  0x82   : > { %957 = vmatpush.bf16.msra.mxu1 %v823_v52  ;;  %v782_v61 = vsub.f32 %v686_v28, %v750_v54  ;;  %v783_v62 = vsub.f32 %v687_v29, %v751_v55  ;;  %v2060_v63 = vshrl.u32 %v393_v14, 7  ;;  %v2062_v0 = vstv %s1572_s29  ;;  %v830_v52 = vld [vmem:[#allocation2] sm:$0xff] }
  0x83   : > { %1143 = vmatpush.bf16.msra.mxu2 %v1104_v57  ;;  %v1112_v1 = vpack.c.b16 %v1089_v58, %v1088_v53  ;;  %v798_v2 = vsub.f32 %v702_v34, %v766_v59  ;;  %v799_v3 = vsub.f32 %v703_v39, %v767_v60  ;;  %v2064_v4 = vperm.slane %v392_v56, 0 }
  0x84   : > { %v814_v5 = vpack.c.bf16 %v783_v62, %v782_v61  ;;  %v395_v6 = vadd.s32 8, %v2060_v63  ;;  %v428_v7 = vadd.s32 %v2062_v0, %v2060_v63  ;;  %v2069_v9 = vperm.slane %v392_v56, 1 }
  0x85   : > { %1232 = vmatpush.bf16.msra.mxu3 %v1112_v1  ;;  %v822_v8 = vpack.c.bf16 %v799_v3, %v798_v2  ;;  %v1893_v10 = vmov 1.0|1.0   ;;  %v396_v11 = vadd.s32 16, %v2060_v63  ;;  %v397_v12 = vadd.s32 24, %v2060_v63  ;;  %v831_v1 = vld [vmem:[#allocation2 + $0x8] sm:$0xff] }
  0x86   : > { %869 = vmatpush.bf16.msra.mxu0 %v814_v5  ;;  %v429_v14 = vadd.s32 %v2062_v0, %v395_v6  ;;  %vm462_vm1 = vcmp.eq.s32.totalorder %v428_v7, %v2064_v4  ;;  %vm463_vm2 = vcmp.eq.s32.totalorder %v428_v7, %v2069_v9  ;;  %v398_v16 = vadd.s32 32, %v2060_v63 }
  0x87   : > { %958 = vmatpush.bf16.msra.mxu1 %v822_v8  ;;  %v430_v13 = vadd.s32 %v2062_v0, %v396_v11  ;;  %v431_v15 = vadd.s32 %v2062_v0, %v397_v12  ;;  %v399_v17 = vadd.s32 40, %v2060_v63  ;;  %v400_v20 = vadd.s32 48, %v2060_v63 }
  0x88   : > { %vm464_vm3 = vcmp.eq.s32.totalorder %v429_v14, %v2064_v4  ;;  %vm465_vm4 = vcmp.eq.s32.totalorder %v429_v14, %v2069_v9  ;;  %v432_v18 = vadd.s32 %v2062_v0, %v398_v16  ;;  %v401_v21 = vadd.s32 56, %v2060_v63 }
  0x89   : > { %vm1637_vm5 = vmpackc.low %vm464_vm3, %vm462_vm1  ;;  %vm466_vm7 = vcmp.eq.s32.totalorder %v430_v13, %v2064_v4  ;;  %vm468_vm8 = vcmp.eq.s32.totalorder %v431_v15, %v2064_v4  ;;  %vm467_vm9 = vcmp.eq.s32.totalorder %v430_v13, %v2069_v9  ;;  %vm469_vm10 = vcmp.eq.s32.totalorder %v431_v15, %v2069_v9  ;;  %v832_v15 = vld [vmem:[#allocation2 + $0x10] sm:$0xff] }
  0x8a   : > { %1702 = vmatmul.msk.bf16.vlgmr.msra.gmra.mxu2 %vm1637_vm5, %v1893_v10  ;;  %vm1669_vm6 = vmpackc.low %vm465_vm4, %vm463_vm2  ;;  %1638 = vmatmul.msk.bf16.vlgmr.msra.gmra.mxu0 %vm1637_vm5, %v1893_v10  ;;  %v433_v19 = vadd.s32 %v2062_v0, %v399_v17  ;;  %vm470_vm13 = vcmp.eq.s32.totalorder %v432_v18, %v2064_v4  ;;  %vm471_vm15 = vcmp.eq.s32.totalorder %v432_v18, %v2069_v9  ;;  %v402_v24 = vadd.s32 64, %v2060_v63 }
  0x8b   : > { %1734 = vmatmul.msk.bf16.vlgmr.msra.gmra.mxu3 %vm1669_vm6, %v1893_v10  ;;  %1670 = vmatmul.msk.bf16.vlgmr.msra.gmra.mxu1 %vm1669_vm6, %v1893_v10  ;;  %vm1639_vm11 = vmpackc.low %vm468_vm8, %vm466_vm7  ;;  %v434_v22 = vadd.s32 %v2062_v0, %v400_v20  ;;  %v435_v23 = vadd.s32 %v2062_v0, %v401_v21  ;;  %v403_v25 = vadd.s32 72, %v2060_v63  ;;  %v404_v28 = vadd.s32 80, %v2060_v63 }
  0x8c   : > { %vm1671_vm12 = vmpackc.low %vm469_vm10, %vm467_vm9  ;;  %vm472_vm14 = vcmp.eq.s32.totalorder %v433_v19, %v2064_v4  ;;  %vm473_vm0 = vcmp.eq.s32.totalorder %v433_v19, %v2069_v9  ;;  %v436_v26 = vadd.s32 %v2062_v0, %v402_v24  ;;  %v405_v29 = vadd.s32 88, %v2060_v63 }
  0x8d   : > { %vm1641_vm1 = vmpackc.low %vm472_vm14, %vm470_vm13  ;;  %vm474_vm3 = vcmp.eq.s32.totalorder %v434_v22, %v2064_v4  ;;  %vm476_vm4 = vcmp.eq.s32.totalorder %v435_v23, %v2064_v4  ;;  %vm475_vm5 = vcmp.eq.s32.totalorder %v434_v22, %v2069_v9  ;;  %vm477_vm6 = vcmp.eq.s32.totalorder %v435_v23, %v2069_v9 }
  0x8e   : > { %vm1673_vm2 = vmpackc.low %vm473_vm0, %vm471_vm15  ;;  %v437_v27 = vadd.s32 %v2062_v0, %v403_v25  ;;  %vm478_vm9 = vcmp.eq.s32.totalorder %v436_v26, %v2064_v4  ;;  %v438_v30 = vadd.s32 %v2062_v0, %v404_v28  ;;  %v439_v31 = vadd.s32 %v2062_v0, %v405_v29 }
  0x8f   : > { %vm1643_vm7 = vmpackc.low %vm476_vm4, %vm474_vm3  ;;  %v406_v32 = vadd.s32 96, %v2060_v63  ;;  %v407_v33 = vadd.s32 104, %v2060_v63  ;;  %v408_v36 = vadd.s32 112, %v2060_v63  ;;  %v409_v37 = vadd.s32 120, %v2060_v63 }
  0x90   : > { %vm1675_vm8 = vmpackc.low %vm477_vm6, %vm475_vm5  ;;  %vm480_vm10 = vcmp.eq.s32.totalorder %v437_v27, %v2064_v4  ;;  %vm482_vm15 = vcmp.eq.s32.totalorder %v438_v30, %v2064_v4  ;;  %vm484_vm0 = vcmp.eq.s32.totalorder %v439_v31, %v2064_v4  ;;  %v410_v40 = vadd.s32 128, %v2060_v63 }
  0x91   : > { %vm1645_vm13 = vmpackc.low %vm480_vm10, %vm478_vm9  ;;  %v440_v34 = vadd.s32 %v2062_v0, %v406_v32  ;;  %v441_v35 = vadd.s32 %v2062_v0, %v407_v33  ;;  %v442_v38 = vadd.s32 %v2062_v0, %v408_v36  ;;  %v443_v39 = vadd.s32 %v2062_v0, %v409_v37  ;;  %v834_v37 = vld [vmem:[#allocation2 + $0x20] sm:$0xff] }
  0x92   : > { %vm1647_vm3 = vmpackc.low %vm484_vm0, %vm482_vm15  ;;  %v411_v41 = vadd.s32 136, %v2060_v63  ;;  %v444_v42 = vadd.s32 %v2062_v0, %v410_v40  ;;  %v412_v47 = vadd.s32 144, %v2060_v63  ;;  %v413_v48 = vadd.s32 152, %v2060_v63 }
  0x93   : > { %vm486_vm5 = vcmp.eq.s32.totalorder %v440_v34, %v2064_v4  ;;  %vm488_vm6 = vcmp.eq.s32.totalorder %v441_v35, %v2064_v4  ;;  %v414_v8 = vadd.s32 160, %v2060_v63  ;;  %v415_v14 = vadd.s32 168, %v2060_v63 }
  0x94   : > { %vm1649_vm9 = vmpackc.low %vm488_vm6, %vm486_vm5  ;;  %v445_v43 = vadd.s32 %v2062_v0, %v411_v41  ;;  %v446_v56 = vadd.s32 %v2062_v0, %v412_v47  ;;  %v447_v57 = vadd.s32 %v2062_v0, %v413_v48  ;;  %v416_v32 = vadd.s32 176, %v2060_v63  ;;  %v835_v48 = vld [vmem:[#allocation2 + $0x28] sm:$0xff] }
  0x95   : > { %v448_v19 = vadd.s32 %v2062_v0, %v414_v8  ;;  %v449_v20 = vadd.s32 %v2062_v0, %v415_v14  ;;  %v417_v33 = vadd.s32 184, %v2060_v63  ;;  %v837_v14 = vld [vmem:[#allocation2 + $0x38] sm:$0xff] }
  0x96   : > { %v450_v41 = vadd.s32 %v2062_v0, %v416_v32 }
  0x9a   : > { %1704 = vmatmul.msk.bf16.gmra.mxu2 %vm1639_vm11, %v1893_v10  ;;  %1640 = vmatmul.msk.bf16.gmra.mxu0 %vm1639_vm11, %v1893_v10  ;;  %vm479_vm11 = vcmp.eq.s32.totalorder %v436_v26, %v2069_v9  ;;  %v833_v26 = vld [vmem:[#allocation2 + $0x18] sm:$0xff] }
  0x9b   : > { %1736 = vmatmul.msk.bf16.gmra.mxu3 %vm1671_vm12, %v1893_v10  ;;  %1672 = vmatmul.msk.bf16.gmra.mxu1 %vm1671_vm12, %v1893_v10  ;;  %vm481_vm12 = vcmp.eq.s32.totalorder %v437_v27, %v2069_v9 }
  0x9c   : > { %vm1677_vm14 = vmpackc.low %vm481_vm12, %vm479_vm11  ;;  %vm490_vm11 = vcmp.eq.s32.totalorder %v442_v38, %v2064_v4  ;;  %vm492_vm12 = vcmp.eq.s32.totalorder %v443_v39, %v2064_v4 }
  0x9d   : > { %vm1651_vm15 = vmpackc.low %vm492_vm12, %vm490_vm11  ;;  %vm501_vm11 = vcmp.eq.s32.totalorder %v447_v57, %v2069_v9 }
  0xaa   : > { %1706 = vmatmul.msk.bf16.gmra.mxu2 %vm1641_vm1, %v1893_v10  ;;  %1642 = vmatmul.msk.bf16.gmra.mxu0 %vm1641_vm1, %v1893_v10  ;;  %vm483_vm1 = vcmp.eq.s32.totalorder %v438_v30, %v2069_v9 }
  0xab   : > { %1738 = vmatmul.msk.bf16.gmra.mxu3 %vm1673_vm2, %v1893_v10  ;;  %1674 = vmatmul.msk.bf16.gmra.mxu1 %vm1673_vm2, %v1893_v10  ;;  %vm485_vm2 = vcmp.eq.s32.totalorder %v439_v31, %v2069_v9 }
  0xac   : > { %vm1679_vm4 = vmpackc.low %vm485_vm2, %vm483_vm1  ;;  %vm494_vm1 = vcmp.eq.s32.totalorder %v444_v42, %v2064_v4  ;;  %vm496_vm2 = vcmp.eq.s32.totalorder %v445_v43, %v2064_v4 }
  0xad   : > { %vm1653_vm5 = vmpackc.low %vm496_vm2, %vm494_vm1  ;;  %vm505_vm1 = vcmp.eq.s32.totalorder %v449_v20, %v2069_v9 }
  0xba   : > { %1708 = vmatmul.msk.bf16.gmra.mxu2 %vm1643_vm7, %v1893_v10  ;;  %1644 = vmatmul.msk.bf16.gmra.mxu0 %vm1643_vm7, %v1893_v10  ;;  %vm487_vm7 = vcmp.eq.s32.totalorder %v440_v34, %v2069_v9 }
  0xbb   : > { %1740 = vmatmul.msk.bf16.gmra.mxu3 %vm1675_vm8, %v1893_v10  ;;  %1676 = vmatmul.msk.bf16.gmra.mxu1 %vm1675_vm8, %v1893_v10  ;;  %vm489_vm8 = vcmp.eq.s32.totalorder %v441_v35, %v2069_v9 }
  0xbc   : > { %vm1681_vm10 = vmpackc.low %vm489_vm8, %vm487_vm7  ;;  %vm1346_vm7 = vcmask 523264   ;;  %vm498_vm8 = vcmp.eq.s32.totalorder %v446_v56, %v2064_v4 }
  0xca   : > { %1710 = vmatmul.msk.bf16.gmra.mxu2 %vm1645_vm13, %v1893_v10  ;;  %1646 = vmatmul.msk.bf16.gmra.mxu0 %vm1645_vm13, %v1893_v10  ;;  %vm491_vm13 = vcmp.eq.s32.totalorder %v442_v38, %v2069_v9 }
  0xcb   : > { %1742 = vmatmul.msk.bf16.gmra.mxu3 %vm1677_vm14, %v1893_v10  ;;  %1678 = vmatmul.msk.bf16.gmra.mxu1 %vm1677_vm14, %v1893_v10  ;;  %vm493_vm14 = vcmp.eq.s32.totalorder %v443_v39, %v2069_v9 }
  0xcc   : > { %vm1683_vm0 = vmpackc.low %vm493_vm14, %vm491_vm13  ;;  %vm502_vm14 = vcmp.eq.s32.totalorder %v448_v19, %v2064_v4 }
  0xda   : > { %1712 = vmatmul.msk.bf16.gmra.mxu2 %vm1647_vm3, %v1893_v10  ;;  %1648 = vmatmul.msk.bf16.gmra.mxu0 %vm1647_vm3, %v1893_v10  ;;  %vm495_vm3 = vcmp.eq.s32.totalorder %v444_v42, %v2069_v9  ;;  %v451_v42 = vadd.s32 %v2062_v0, %v417_v33  ;;  %v839_v33 = vld [vmem:[#allocation2 + $0x48] sm:$0xff] }
  0xdb   : > { %1744 = vmatmul.msk.bf16.gmra.mxu3 %vm1679_vm4, %v1893_v10  ;;  %1680 = vmatmul.msk.bf16.gmra.mxu1 %vm1679_vm4, %v1893_v10  ;;  %vm497_vm4 = vcmp.eq.s32.totalorder %v445_v43, %v2069_v9 }
  0xdc   : > { %vm1685_vm6 = vmpackc.low %vm497_vm4, %vm495_vm3  ;;  %vm506_vm4 = vcmp.eq.s32.totalorder %v450_v41, %v2064_v4 }
  0xea   : > { %1714 = vmatmul.msk.bf16.gmra.mxu2 %vm1649_vm9, %v1893_v10  ;;  %1650 = vmatmul.msk.bf16.gmra.mxu0 %vm1649_vm9, %v1893_v10  ;;  %vm500_vm9 = vcmp.eq.s32.totalorder %v447_v57, %v2064_v4 }
  0xeb   : > { %1746 = vmatmul.msk.bf16.gmra.mxu3 %vm1681_vm10, %v1893_v10  ;;  %1682 = vmatmul.msk.bf16.gmra.mxu1 %vm1681_vm10, %v1893_v10  ;;  %vm499_vm10 = vcmp.eq.s32.totalorder %v446_v56, %v2069_v9  ;;  %vm1655_vm12 = vmpackc.low %vm500_vm9, %vm498_vm8  ;;  %vm509_vm8 = vcmp.eq.s32.totalorder %v451_v42, %v2069_v9 }
  0xec   : > { %vm1687_vm13 = vmpackc.low %vm501_vm11, %vm499_vm10 }
  0xfa   : > { %1716 = vmatmul.msk.bf16.gmra.mxu2 %vm1651_vm15, %v1893_v10  ;;  %1652 = vmatmul.msk.bf16.gmra.mxu0 %vm1651_vm15, %v1893_v10  ;;  %vm504_vm15 = vcmp.eq.s32.totalorder %v449_v20, %v2064_v4 }
  0xfb   : > { %1748 = vmatmul.msk.bf16.gmra.mxu3 %vm1683_vm0, %v1893_v10  ;;  %1684 = vmatmul.msk.bf16.gmra.mxu1 %vm1683_vm0, %v1893_v10  ;;  %vm503_vm0 = vcmp.eq.s32.totalorder %v448_v19, %v2069_v9  ;;  %vm1657_vm2 = vmpackc.low %vm504_vm15, %vm502_vm14 }
  0xfc   : > { %vm1689_vm3 = vmpackc.low %vm505_vm1, %vm503_vm0 }
 0x107   : > { %v871_v44 = vpop.f32.mrf.mxu0 }
 0x108   : > { %v960_v45 = vpop.f32.mrf.mxu1 }
 0x109   : > { %v961_v46 = vadd.f32 %v960_v45, %v871_v44 }
 0x10a   : > { %1718 = vmatmul.msk.bf16.gmra.mxu2 %vm1653_vm5, %v1893_v10  ;;  %1654 = vmatmul.msk.bf16.gmra.mxu0 %vm1653_vm5, %v1893_v10  ;;  %vm508_vm5 = vcmp.eq.s32.totalorder %v451_v42, %v2064_v4 }
 0x10b   : > { %1750 = vmatmul.msk.bf16.gmra.mxu3 %vm1685_vm6, %v1893_v10  ;;  %1686 = vmatmul.msk.bf16.gmra.mxu1 %vm1685_vm6, %v1893_v10  ;;  %vm507_vm6 = vcmp.eq.s32.totalorder %v450_v41, %v2069_v9  ;;  %vm1659_vm9 = vmpackc.low %vm508_vm5, %vm506_vm4 }
 0x10c   : > { %vm1691_vm10 = vmpackc.low %vm509_vm8, %vm507_vm6 }
 0x10d   : > { %v1145_v49 = vpop.f32.mrf.mxu2 }
 0x10e   : > { %v1146_v50 = vadd.f32 %v1145_v49, %v961_v46  ;;  %v1234_v51 = vpop.f32.mrf.mxu3 }
 0x10f   : > { %v873_v53 = vpop.f32.mrf.mxu0 }
 0x110   : > { %v1235_v54 = vadd.f32 %v1234_v51, %v1146_v50  ;;  %v962_v55 = vpop.f32.mrf.mxu1 }
 0x111   : > { %v963_v59 = vadd.f32 %v962_v55, %v873_v53  ;;  %v419_v55 = vadd.s32 200, %v2060_v63 }
 0x112   : > { %v1314_v58 = vadd.f32 %v1235_v54, %v830_v52  ;;  %v418_v54 = vadd.s32 192, %v2060_v63 }
 0x114   : > { %1347 = vst.msk [vmem:[#allocation2] sm:$0xff] %vm1346_vm7, %v1314_v58 }
 0x115   : > { %v1147_v60 = vpop.f32.mrf.mxu2 }
 0x116   : > { %v1148_v61 = vadd.f32 %v1147_v60, %v963_v59  ;;  %v1236_v62 = vpop.f32.mrf.mxu3  ;;  %v836_v59 = vld [vmem:[#allocation2 + $0x30] sm:$0xff] }
 0x117   : > { %v876_v2 = vpop.f32.mrf.mxu0 }
 0x118   : > { %v1237_v3 = vadd.f32 %v1236_v62, %v1148_v61  ;;  %v965_v5 = vpop.f32.mrf.mxu1 }
 0x119   : > { %v966_v7 = vadd.f32 %v965_v5, %v876_v2  ;;  %v453_v2 = vadd.s32 %v2062_v0, %v419_v55  ;;  %v841_v55 = vld [vmem:[#allocation2 + $0x58] sm:$0xff] }
 0x11a   : > { %v1315_v6 = vadd.f32 %v1237_v3, %v831_v1  ;;  %1720 = vmatmul.msk.bf16.gmra.mxu2 %vm1655_vm12, %v1893_v10  ;;  %1656 = vmatmul.msk.bf16.gmra.mxu0 %vm1655_vm12, %v1893_v10  ;;  %v452_v1 = vadd.s32 %v2062_v0, %v418_v54 }
 0x11b   : > { %1752 = vmatmul.msk.bf16.gmra.mxu3 %vm1687_vm13, %v1893_v10  ;;  %1688 = vmatmul.msk.bf16.gmra.mxu1 %vm1687_vm13, %v1893_v10  ;;  %vm512_vm12 = vcmp.eq.s32.totalorder %v453_v2, %v2064_v4  ;;  %vm513_vm14 = vcmp.eq.s32.totalorder %v453_v2, %v2069_v9 }
 0x11c   : > { %1348 = vst.msk [vmem:[#allocation2 + $0x8] sm:$0xff] %vm1346_vm7, %v1315_v6  ;;  %vm510_vm11 = vcmp.eq.s32.totalorder %v452_v1, %v2064_v4  ;;  %vm511_vm13 = vcmp.eq.s32.totalorder %v452_v1, %v2069_v9 }
 0x11d   : > { %v1150_v11 = vpop.f32.mrf.mxu2  ;;  %vm1661_vm15 = vmpackc.low %vm512_vm12, %vm510_vm11 }
 0x11e   : > { %v1151_v12 = vadd.f32 %v1150_v11, %v966_v7  ;;  %v1239_v13 = vpop.f32.mrf.mxu3  ;;  %vm1693_vm0 = vmpackc.low %vm513_vm14, %vm511_vm13 }
 0x11f   : > { %v878_v16 = vpop.f32.mrf.mxu0 }
 0x120   : > { %v1240_v17 = vadd.f32 %v1239_v13, %v1151_v12  ;;  %v967_v18 = vpop.f32.mrf.mxu1 }
 0x121   : > { %v968_v22 = vadd.f32 %v967_v18, %v878_v16  ;;  %v421_v18 = vadd.s32 216, %v2060_v63 }
 0x122   : > { %v1316_v21 = vadd.f32 %v1240_v17, %v832_v15  ;;  %v420_v17 = vadd.s32 208, %v2060_v63 }
 0x124   : > { %1349 = vst.msk [vmem:[#allocation2 + $0x10] sm:$0xff] %vm1346_vm7, %v1316_v21 }
 0x125   : > { %v1152_v23 = vpop.f32.mrf.mxu2 }
 0x126   : > { %v1153_v24 = vadd.f32 %v1152_v23, %v968_v22  ;;  %v1241_v25 = vpop.f32.mrf.mxu3  ;;  %v838_v22 = vld [vmem:[#allocation2 + $0x40] sm:$0xff] }
 0x127   : > { %v881_v27 = vpop.f32.mrf.mxu0 }
 0x128   : > { %v1242_v28 = vadd.f32 %v1241_v25, %v1153_v24  ;;  %v970_v29 = vpop.f32.mrf.mxu1 }
 0x129   : > { %v971_v31 = vadd.f32 %v970_v29, %v881_v27  ;;  %v455_v27 = vadd.s32 %v2062_v0, %v421_v18 }
 0x12a   : > { %v1317_v30 = vadd.f32 %v1242_v28, %v833_v26  ;;  %1722 = vmatmul.msk.bf16.gmra.mxu2 %vm1657_vm2, %v1893_v10  ;;  %1658 = vmatmul.msk.bf16.gmra.mxu0 %vm1657_vm2, %v1893_v10  ;;  %v454_v26 = vadd.s32 %v2062_v0, %v420_v17  ;;  %v843_v17 = vld [vmem:[#allocation2 + $0x68] sm:$0xff] }
 0x12b   : > { %1754 = vmatmul.msk.bf16.gmra.mxu3 %vm1689_vm3, %v1893_v10  ;;  %1690 = vmatmul.msk.bf16.gmra.mxu1 %vm1689_vm3, %v1893_v10  ;;  %vm516_vm2 = vcmp.eq.s32.totalorder %v455_v27, %v2064_v4  ;;  %vm517_vm4 = vcmp.eq.s32.totalorder %v455_v27, %v2069_v9 }
 0x12c   : > { %1350 = vst.msk [vmem:[#allocation2 + $0x18] sm:$0xff] %vm1346_vm7, %v1317_v30  ;;  %vm514_vm1 = vcmp.eq.s32.totalorder %v454_v26, %v2064_v4  ;;  %vm515_vm3 = vcmp.eq.s32.totalorder %v454_v26, %v2069_v9 }
 0x12d   : > { %v1155_v34 = vpop.f32.mrf.mxu2  ;;  %vm1663_vm5 = vmpackc.low %vm516_vm2, %vm514_vm1 }
 0x12e   : > { %v1156_v35 = vadd.f32 %v1155_v34, %v971_v31  ;;  %v1244_v36 = vpop.f32.mrf.mxu3  ;;  %vm1695_vm6 = vmpackc.low %vm517_vm4, %vm515_vm3 }
 0x12f   : > { %v883_v38 = vpop.f32.mrf.mxu0 }
 0x130   : > { %v1245_v39 = vadd.f32 %v1244_v36, %v1156_v35  ;;  %v972_v40 = vpop.f32.mrf.mxu1 }
 0x131   : > { %v973_v44 = vadd.f32 %v972_v40, %v883_v38  ;;  %v423_v40 = vadd.s32 232, %v2060_v63 }
 0x132   : > { %v1318_v43 = vadd.f32 %v1245_v39, %v834_v37  ;;  %v422_v39 = vadd.s32 224, %v2060_v63 }
 0x134   : > { %1351 = vst.msk [vmem:[#allocation2 + $0x20] sm:$0xff] %vm1346_vm7, %v1318_v43 }
 0x135   : > { %v1157_v45 = vpop.f32.mrf.mxu2 }
 0x136   : > { %v1158_v46 = vadd.f32 %v1157_v45, %v973_v44  ;;  %v1246_v47 = vpop.f32.mrf.mxu3  ;;  %v840_v44 = vld [vmem:[#allocation2 + $0x50] sm:$0xff] }
 0x137   : > { %v886_v49 = vpop.f32.mrf.mxu0 }
 0x138   : > { %v1247_v50 = vadd.f32 %v1246_v47, %v1158_v46  ;;  %v975_v51 = vpop.f32.mrf.mxu1 }
 0x139   : > { %v976_v53 = vadd.f32 %v975_v51, %v886_v49  ;;  %v457_v49 = vadd.s32 %v2062_v0, %v423_v40  ;;  %v846_v40 = vld [vmem:[#allocation2 + $0x80] sm:$0xff] }
 0x13a   : > { %v1319_v52 = vadd.f32 %v1247_v50, %v835_v48  ;;  %1724 = vmatmul.msk.bf16.gmra.mxu2 %vm1659_vm9, %v1893_v10  ;;  %1660 = vmatmul.msk.bf16.gmra.mxu0 %vm1659_vm9, %v1893_v10  ;;  %v456_v48 = vadd.s32 %v2062_v0, %v422_v39 }
 0x13b   : > { %1756 = vmatmul.msk.bf16.gmra.mxu3 %vm1691_vm10, %v1893_v10  ;;  %1692 = vmatmul.msk.bf16.gmra.mxu1 %vm1691_vm10, %v1893_v10  ;;  %vm520_vm9 = vcmp.eq.s32.totalorder %v457_v49, %v2064_v4  ;;  %vm521_vm11 = vcmp.eq.s32.totalorder %v457_v49, %v2069_v9  ;;  %v847_v49 = vld [vmem:[#allocation2 + $0x88] sm:$0xff] }
 0x13c   : > { %1352 = vst.msk [vmem:[#allocation2 + $0x28] sm:$0xff] %vm1346_vm7, %v1319_v52  ;;  %vm518_vm8 = vcmp.eq.s32.totalorder %v456_v48, %v2064_v4  ;;  %vm519_vm10 = vcmp.eq.s32.totalorder %v456_v48, %v2069_v9 }
 0x13d   : > { %v1160_v56 = vpop.f32.mrf.mxu2  ;;  %vm1665_vm12 = vmpackc.low %vm520_vm9, %vm518_vm8 }
 0x13e   : > { %v1161_v57 = vadd.f32 %v1160_v56, %v976_v53  ;;  %v1249_v58 = vpop.f32.mrf.mxu3  ;;  %vm1697_vm13 = vmpackc.low %vm521_vm11, %vm519_vm10 }
 0x13f   : > { %v888_v60 = vpop.f32.mrf.mxu0 }
 0x140   : > { %v1250_v61 = vadd.f32 %v1249_v58, %v1161_v57  ;;  %v977_v62 = vpop.f32.mrf.mxu1 }
 0x141   : > { %v978_v5 = vadd.f32 %v977_v62, %v888_v60  ;;  %v425_v62 = vadd.s32 248, %v2060_v63 }
 0x142   : > { %v1320_v3 = vadd.f32 %v1250_v61, %v836_v59  ;;  %v424_v61 = vadd.s32 240, %v2060_v63 }
 0x144   : > { %1353 = vst.msk [vmem:[#allocation2 + $0x30] sm:$0xff] %vm1346_vm7, %v1320_v3 }
 0x145   : > { %v1162_v6 = vpop.f32.mrf.mxu2 }
 0x146   : > { %v1163_v7 = vadd.f32 %v1162_v6, %v978_v5  ;;  %v1251_v8 = vpop.f32.mrf.mxu3  ;;  %v842_v5 = vld [vmem:[#allocation2 + $0x60] sm:$0xff] }
 0x147   : > { %v891_v11 = vpop.f32.mrf.mxu0 }
 0x148   : > { %v1252_v12 = vadd.f32 %v1251_v8, %v1163_v7  ;;  %v980_v13 = vpop.f32.mrf.mxu1 }
 0x149   : > { %v981_v16 = vadd.f32 %v980_v13, %v891_v11  ;;  %v459_v11 = vadd.s32 %v2062_v0, %v425_v62 }
 0x14a   : > { %v1321_v15 = vadd.f32 %v1252_v12, %v837_v14  ;;  %1726 = vmatmul.msk.bf16.gmra.mxu2 %vm1661_vm15, %v1893_v10  ;;  %1662 = vmatmul.msk.bf16.gmra.mxu0 %vm1661_vm15, %v1893_v10  ;;  %v458_v14 = vadd.s32 %v2062_v0, %v424_v61 }
 0x14b   : > { %1758 = vmatmul.msk.bf16.gmra.mxu3 %vm1693_vm0, %v1893_v10  ;;  %1694 = vmatmul.msk.bf16.gmra.mxu1 %vm1693_vm0, %v1893_v10  ;;  %vm524_vm15 = vcmp.eq.s32.totalorder %v459_v11, %v2064_v4  ;;  %vm525_vm1 = vcmp.eq.s32.totalorder %v459_v11, %v2069_v9 }
 0x14c   : > { %1354 = vst.msk [vmem:[#allocation2 + $0x38] sm:$0xff] %vm1346_vm7, %v1321_v15  ;;  %vm522_vm14 = vcmp.eq.s32.totalorder %v458_v14, %v2064_v4  ;;  %vm523_vm0 = vcmp.eq.s32.totalorder %v458_v14, %v2069_v9 }
 0x14d   : > { %v1165_v19 = vpop.f32.mrf.mxu2  ;;  %vm1667_vm2 = vmpackc.low %vm524_vm15, %vm522_vm14 }
 0x14e   : > { %v1166_v20 = vadd.f32 %v1165_v19, %v981_v16  ;;  %v1254_v21 = vpop.f32.mrf.mxu3  ;;  %vm1699_vm3 = vmpackc.low %vm525_vm1, %vm523_vm0 }
 0x14f   : > { %v893_v23 = vpop.f32.mrf.mxu0 }
 0x150   : > { %v1255_v24 = vadd.f32 %v1254_v21, %v1166_v20  ;;  %v982_v25 = vpop.f32.mrf.mxu1 }
 0x151   : > { %v983_v29 = vadd.f32 %v982_v25, %v893_v23  ;;  %v844_v23 = vld [vmem:[#allocation2 + $0x70] sm:$0xff] }
 0x152   : > { %v1322_v28 = vadd.f32 %v1255_v24, %v838_v22 }
 0x154   : > { %1355 = vst.msk [vmem:[#allocation2 + $0x40] sm:$0xff] %vm1346_vm7, %v1322_v28 }
 0x155   : > { %v1167_v30 = vpop.f32.mrf.mxu2 }
 0x156   : > { %v1168_v31 = vadd.f32 %v1167_v30, %v983_v29  ;;  %v1256_v32 = vpop.f32.mrf.mxu3 }
 0x157   : > { %v896_v34 = vpop.f32.mrf.mxu0 }
 0x158   : > { %v1257_v35 = vadd.f32 %v1256_v32, %v1168_v31  ;;  %v985_v36 = vpop.f32.mrf.mxu1  ;;  %v845_v32 = vld [vmem:[#allocation2 + $0x78] sm:$0xff] }
 0x159   : > { %v986_v38 = vadd.f32 %v985_v36, %v896_v34 }
 0x15a   : > { %v1323_v37 = vadd.f32 %v1257_v35, %v839_v33  ;;  %1728 = vmatmul.msk.bf16.gmra.mxu2 %vm1663_vm5, %v1893_v10  ;;  %1664 = vmatmul.msk.bf16.gmra.mxu0 %vm1663_vm5, %v1893_v10 }
 0x15b   : > { %1760 = vmatmul.msk.bf16.gmra.mxu3 %vm1695_vm6, %v1893_v10  ;;  %1696 = vmatmul.msk.bf16.gmra.mxu1 %vm1695_vm6, %v1893_v10 }
 0x15c   : > { %1356 = vst.msk [vmem:[#allocation2 + $0x48] sm:$0xff] %vm1346_vm7, %v1323_v37 }
 0x15d   : > { %v1170_v41 = vpop.f32.mrf.mxu2 }
 0x15e   : > { %v1171_v42 = vadd.f32 %v1170_v41, %v986_v38  ;;  %v1259_v43 = vpop.f32.mrf.mxu3 }
 0x15f   : > { %v898_v45 = vpop.f32.mrf.mxu0 }
 0x160   : > { %v1260_v46 = vadd.f32 %v1259_v43, %v1171_v42  ;;  %v987_v47 = vpop.f32.mrf.mxu1 }
 0x161   : > { %v988_v51 = vadd.f32 %v987_v47, %v898_v45 }
 0x162   : > { %v1324_v50 = vadd.f32 %v1260_v46, %v840_v44 }
 0x164   : > { %1357 = vst.msk [vmem:[#allocation2 + $0x50] sm:$0xff] %vm1346_vm7, %v1324_v50 }
 0x165   : > { %v1172_v52 = vpop.f32.mrf.mxu2 }
 0x166   : > { %v1173_v53 = vadd.f32 %v1172_v52, %v988_v51  ;;  %v1261_v54 = vpop.f32.mrf.mxu3 }
 0x167   : > { %v901_v56 = vpop.f32.mrf.mxu0 }
 0x168   : > { %v1262_v57 = vadd.f32 %v1261_v54, %v1173_v53  ;;  %v990_v58 = vpop.f32.mrf.mxu1 }
 0x169   : > { %v991_v60 = vadd.f32 %v990_v58, %v901_v56  ;;  %v848_v58 = vld [vmem:[#allocation2 + $0x90] sm:$0xff] }
 0x16a   : > { %v1325_v59 = vadd.f32 %v1262_v57, %v841_v55  ;;  %1730 = vmatmul.msk.bf16.gmra.mxu2 %vm1665_vm12, %v1893_v10  ;;  %1666 = vmatmul.msk.bf16.gmra.mxu0 %vm1665_vm12, %v1893_v10 }
 0x16b   : > { %1762 = vmatmul.msk.bf16.gmra.mxu3 %vm1697_vm13, %v1893_v10  ;;  %1698 = vmatmul.msk.bf16.gmra.mxu1 %vm1697_vm13, %v1893_v10 }
 0x16c   : > { %1358 = vst.msk [vmem:[#allocation2 + $0x58] sm:$0xff] %vm1346_vm7, %v1325_v59 }
 0x16d   : > { %v1175_v1 = vpop.f32.mrf.mxu2 }
 0x16e   : > { %v1176_v2 = vadd.f32 %v1175_v1, %v991_v60  ;;  %v1264_v3 = vpop.f32.mrf.mxu3 }
 0x16f   : > { %v903_v6 = vpop.f32.mrf.mxu0 }
 0x170   : > { %v1265_v7 = vadd.f32 %v1264_v3, %v1176_v2  ;;  %v992_v8 = vpop.f32.mrf.mxu1 }
 0x171   : > { %v993_v13 = vadd.f32 %v992_v8, %v903_v6  ;;  %v849_v6 = vld [vmem:[#allocation2 + $0x98] sm:$0xff] }
 0x172   : > { %v1326_v12 = vadd.f32 %v1265_v7, %v842_v5 }
 0x174   : > { %1359 = vst.msk [vmem:[#allocation2 + $0x60] sm:$0xff] %vm1346_vm7, %v1326_v12 }
 0x175   : > { %v1177_v63 = vpop.f32.mrf.mxu2 }
 0x176   : > { %v1178_v15 = vadd.f32 %v1177_v63, %v993_v13  ;;  %v1266_v16 = vpop.f32.mrf.mxu3 }
 0x177   : > { %v906_v18 = vpop.f32.mrf.mxu0 }
 0x178   : > { %v1267_v19 = vadd.f32 %v1266_v16, %v1178_v15  ;;  %v995_v0 = vpop.f32.mrf.mxu1  ;;  %v850_v16 = vld [vmem:[#allocation2 + $0xa0] sm:$0xff] }
 0x179   : > { %v996_v21 = vadd.f32 %v995_v0, %v906_v18 }
 0x17a   : > { %v1327_v20 = vadd.f32 %v1267_v19, %v843_v17  ;;  %1732 = vmatmul.msk.bf16.gmra.mxu2 %vm1667_vm2, %v1893_v10  ;;  %1668 = vmatmul.msk.bf16.gmra.mxu0 %vm1667_vm2, %v1893_v10 }
 0x17b   : > { %1764 = vmatmul.msk.bf16.gmra.mxu3 %vm1699_vm3, %v1893_v10  ;;  %1700 = vmatmul.msk.bf16.gmra.mxu1 %vm1699_vm3, %v1893_v10 }
 0x17c   : > { %1360 = vst.msk [vmem:[#allocation2 + $0x68] sm:$0xff] %vm1346_vm7, %v1327_v20 }
 0x17d   : > { %v1180_v4 = vpop.f32.mrf.mxu2 }
 0x17e   : > { %v1181_v9 = vadd.f32 %v1180_v4, %v996_v21  ;;  %v1269_v22 = vpop.f32.mrf.mxu3 }
 0x17f   : > { %v908_v24 = vpop.f32.mrf.mxu0 }
 0x180   : > { %v1270_v25 = vadd.f32 %v1269_v22, %v1181_v9  ;;  %v997_v26 = vpop.f32.mrf.mxu1  ;;  %v851_v22 = vld [vmem:[#allocation2 + $0xa8] sm:$0xff] }
 0x181   : > { %v998_v28 = vadd.f32 %v997_v26, %v908_v24 }
 0x182   : > { %v1328_v27 = vadd.f32 %v1270_v25, %v844_v23 }
 0x184   : > { %1361 = vst.msk [vmem:[#allocation2 + $0x70] sm:$0xff] %vm1346_vm7, %v1328_v27 }
 0x185   : > { %v1182_v29 = vpop.f32.mrf.mxu2 }
 0x186   : > { %v1183_v30 = vadd.f32 %v1182_v29, %v998_v28  ;;  %v1271_v31 = vpop.f32.mrf.mxu3 }
 0x187   : > { %v911_v33 = vpop.f32.mrf.mxu0 }
 0x188   : > { %v1272_v34 = vadd.f32 %v1271_v31, %v1183_v30  ;;  %v1000_v10 = vpop.f32.mrf.mxu1  ;;  %v852_v31 = vld [vmem:[#allocation2 + $0xb0] sm:$0xff] }
 0x189   : > { %v1001_v36 = vadd.f32 %v1000_v10, %v911_v33 }
 0x18a   : > { %v1329_v35 = vadd.f32 %v1272_v34, %v845_v32 }
 0x18c   : > { %1362 = vst.msk [vmem:[#allocation2 + $0x78] sm:$0xff] %vm1346_vm7, %v1329_v35 }
 0x18d   : > { %v1185_v37 = vpop.f32.mrf.mxu2 }
 0x18e   : > { %v1186_v38 = vadd.f32 %v1185_v37, %v1001_v36  ;;  %v1274_v39 = vpop.f32.mrf.mxu3 }
 0x18f   : > { %v913_v41 = vpop.f32.mrf.mxu0 }
 0x190   : > { %v1275_v42 = vadd.f32 %v1274_v39, %v1186_v38  ;;  %v1002_v43 = vpop.f32.mrf.mxu1  ;;  %v853_v39 = vld [vmem:[#allocation2 + $0xb8] sm:$0xff] }
 0x191   : > { %v1003_v45 = vadd.f32 %v1002_v43, %v913_v41 }
 0x192   : > { %v1330_v44 = vadd.f32 %v1275_v42, %v846_v40 }
 0x194   : > { %1363 = vst.msk [vmem:[#allocation2 + $0x80] sm:$0xff] %vm1346_vm7, %v1330_v44 }
 0x195   : > { %v1187_v46 = vpop.f32.mrf.mxu2 }
 0x196   : > { %v1188_v47 = vadd.f32 %v1187_v46, %v1003_v45  ;;  %v1276_v48 = vpop.f32.mrf.mxu3 }
 0x197   : > { %v916_v50 = vpop.f32.mrf.mxu0 }
 0x198   : > { %v1277_v51 = vadd.f32 %v1276_v48, %v1188_v47  ;;  %v1005_v52 = vpop.f32.mrf.mxu1  ;;  %v854_v48 = vld [vmem:[#allocation2 + $0xc0] sm:$0xff] }
 0x199   : > { %v1006_v54 = vadd.f32 %v1005_v52, %v916_v50 }
 0x19a   : > { %v1331_v53 = vadd.f32 %v1277_v51, %v847_v49 }
 0x19c   : > { %1364 = vst.msk [vmem:[#allocation2 + $0x88] sm:$0xff] %vm1346_vm7, %v1331_v53 }
 0x19d   : > { %v1190_v55 = vpop.f32.mrf.mxu2 }
 0x19e   : > { %v1191_v56 = vadd.f32 %v1190_v55, %v1006_v54  ;;  %v1279_v57 = vpop.f32.mrf.mxu3 }
 0x19f   : > { %v918_v59 = vpop.f32.mrf.mxu0 }
 0x1a0   : > { %v1280_v60 = vadd.f32 %v1279_v57, %v1191_v56  ;;  %v1007_v61 = vpop.f32.mrf.mxu1  ;;  %v855_v57 = vld [vmem:[#allocation2 + $0xc8] sm:$0xff] }
 0x1a1   : > { %v1008_v1 = vadd.f32 %v1007_v61, %v918_v59 }
 0x1a2   : > { %v1332_v62 = vadd.f32 %v1280_v60, %v848_v58 }
 0x1a4   : > { %1365 = vst.msk [vmem:[#allocation2 + $0x90] sm:$0xff] %vm1346_vm7, %v1332_v62 }
 0x1a5   : > { %v1192_v2 = vpop.f32.mrf.mxu2 }
 0x1a6   : > { %v1193_v3 = vadd.f32 %v1192_v2, %v1008_v1  ;;  %v1281_v5 = vpop.f32.mrf.mxu3 }
 0x1a7   : > { %v921_v7 = vpop.f32.mrf.mxu0 }
 0x1a8   : > { %v1282_v8 = vadd.f32 %v1281_v5, %v1193_v3  ;;  %v1010_v14 = vpop.f32.mrf.mxu1  ;;  %v856_v5 = vld [vmem:[#allocation2 + $0xd0] sm:$0xff] }
 0x1a9   : > { %v1011_v12 = vadd.f32 %v1010_v14, %v921_v7 }
 0x1aa   : > { %v1333_v11 = vadd.f32 %v1282_v8, %v849_v6 }
 0x1ac   : > { %1366 = vst.msk [vmem:[#allocation2 + $0x98] sm:$0xff] %vm1346_vm7, %v1333_v11 }
 0x1ad   : > { %v1195_v13 = vpop.f32.mrf.mxu2 }
 0x1ae   : > { %v1196_v63 = vadd.f32 %v1195_v13, %v1011_v12  ;;  %v1284_v15 = vpop.f32.mrf.mxu3 }
 0x1af   : > { %v923_v17 = vpop.f32.mrf.mxu0 }
 0x1b0   : > { %v1285_v18 = vadd.f32 %v1284_v15, %v1196_v63  ;;  %v1012_v19 = vpop.f32.mrf.mxu1  ;;  %v857_v15 = vld [vmem:[#allocation2 + $0xd8] sm:$0xff] }
 0x1b1   : > { %v1013_v20 = vadd.f32 %v1012_v19, %v923_v17 }
 0x1b2   : > { %v1334_v0 = vadd.f32 %v1285_v18, %v850_v16 }
 0x1b4   : > { %1367 = vst.msk [vmem:[#allocation2 + $0xa0] sm:$0xff] %vm1346_vm7, %v1334_v0 }
 0x1b5   : > { %v1197_v21 = vpop.f32.mrf.mxu2 }
 0x1b6   : > { %v1198_v4 = vadd.f32 %v1197_v21, %v1013_v20  ;;  %v1286_v9 = vpop.f32.mrf.mxu3 }
 0x1b7   : > { %v926_v23 = vpop.f32.mrf.mxu0 }
 0x1b8   : > { %v1287_v24 = vadd.f32 %v1286_v9, %v1198_v4  ;;  %v1015_v25 = vpop.f32.mrf.mxu1  ;;  %v858_v9 = vld [vmem:[#allocation2 + $0xe0] sm:$0xff] }
 0x1b9   : > { %v1016_v27 = vadd.f32 %v1015_v25, %v926_v23 }
 0x1ba   : > { %v1335_v26 = vadd.f32 %v1287_v24, %v851_v22 }
 0x1bc   : > { %1368 = vst.msk [vmem:[#allocation2 + $0xa8] sm:$0xff] %vm1346_vm7, %v1335_v26 }
 0x1bd   : > { %v1200_v28 = vpop.f32.mrf.mxu2 }
 0x1be   : > { %v1201_v29 = vadd.f32 %v1200_v28, %v1016_v27  ;;  %v1289_v30 = vpop.f32.mrf.mxu3 }
 0x1bf   : > { %v928_v32 = vpop.f32.mrf.mxu0 }
 0x1c0   : > { %v1290_v33 = vadd.f32 %v1289_v30, %v1201_v29  ;;  %v1017_v34 = vpop.f32.mrf.mxu1  ;;  %v859_v30 = vld [vmem:[#allocation2 + $0xe8] sm:$0xff] }
 0x1c1   : > { %v1018_v35 = vadd.f32 %v1017_v34, %v928_v32 }
 0x1c2   : > { %v1336_v10 = vadd.f32 %v1290_v33, %v852_v31 }
 0x1c4   : > { %1369 = vst.msk [vmem:[#allocation2 + $0xb0] sm:$0xff] %vm1346_vm7, %v1336_v10 }
 0x1c5   : > { %v1202_v36 = vpop.f32.mrf.mxu2 }
 0x1c6   : > { %v1203_v37 = vadd.f32 %v1202_v36, %v1018_v35  ;;  %v1291_v38 = vpop.f32.mrf.mxu3 }
 0x1c7   : > { %v931_v40 = vpop.f32.mrf.mxu0 }
 0x1c8   : > { %v1292_v41 = vadd.f32 %v1291_v38, %v1203_v37  ;;  %v1020_v42 = vpop.f32.mrf.mxu1  ;;  %v860_v38 = vld [vmem:[#allocation2 + $0xf0] sm:$0xff] }
 0x1c9   : > { %v1021_v44 = vadd.f32 %v1020_v42, %v931_v40 }
 0x1ca   : > { %v1337_v43 = vadd.f32 %v1292_v41, %v853_v39 }
 0x1cc   : > { %1370 = vst.msk [vmem:[#allocation2 + $0xb8] sm:$0xff] %vm1346_vm7, %v1337_v43 }
 0x1cd   : > { %v1205_v45 = vpop.f32.mrf.mxu2 }
 0x1ce   : > { %v1206_v46 = vadd.f32 %v1205_v45, %v1021_v44  ;;  %v1294_v47 = vpop.f32.mrf.mxu3 }
 0x1cf   : > { %v933_v49 = vpop.f32.mrf.mxu0 }
 0x1d0   : > { %v1295_v50 = vadd.f32 %v1294_v47, %v1206_v46  ;;  %v1022_v51 = vpop.f32.mrf.mxu1  ;;  %v861_v46 = vld [vmem:[#allocation2 + $0xf8] sm:$0xff] }
 0x1d1   : > { %v1023_v53 = vadd.f32 %v1022_v51, %v933_v49 }
 0x1d2   : > { %v1338_v52 = vadd.f32 %v1295_v50, %v854_v48 }
 0x1d4   : > { %1371 = vst.msk [vmem:[#allocation2 + $0xc0] sm:$0xff] %vm1346_vm7, %v1338_v52 }
 0x1d5   : > { %v1207_v54 = vpop.f32.mrf.mxu2 }
 0x1d6   : > { %v1208_v55 = vadd.f32 %v1207_v54, %v1023_v53  ;;  %v1296_v56 = vpop.f32.mrf.mxu3 }
 0x1d7   : > { %v936_v58 = vpop.f32.mrf.mxu0 }
 0x1d8   : > { %v1297_v59 = vadd.f32 %v1296_v56, %v1208_v55  ;;  %v1025_v60 = vpop.f32.mrf.mxu1 }
 0x1d9   : > { %v1026_v62 = vadd.f32 %v1025_v60, %v936_v58 }
 0x1da   : > { %v1339_v61 = vadd.f32 %v1297_v59, %v855_v57 }
 0x1dc   : > { %1372 = vst.msk [vmem:[#allocation2 + $0xc8] sm:$0xff] %vm1346_vm7, %v1339_v61 }
 0x1dd   : > { %v1210_v1 = vpop.f32.mrf.mxu2 }
 0x1de   : > { %v1211_v2 = vadd.f32 %v1210_v1, %v1026_v62  ;;  %v1299_v3 = vpop.f32.mrf.mxu3 }
 0x1df   : > { %v938_v6 = vpop.f32.mrf.mxu0 }
 0x1e0   : > { %v1300_v7 = vadd.f32 %v1299_v3, %v1211_v2  ;;  %v1027_v8 = vpop.f32.mrf.mxu1 }
 0x1e1   : > { %v1028_v11 = vadd.f32 %v1027_v8, %v938_v6 }
 0x1e2   : > { %v1340_v14 = vadd.f32 %v1300_v7, %v856_v5 }
 0x1e4   : > { %1373 = vst.msk [vmem:[#allocation2 + $0xd0] sm:$0xff] %vm1346_vm7, %v1340_v14 }
 0x1e5   : > { %v1212_v12 = vpop.f32.mrf.mxu2 }
 0x1e6   : > { %v1213_v13 = vadd.f32 %v1212_v12, %v1028_v11  ;;  %v1301_v63 = vpop.f32.mrf.mxu3 }
 0x1e7   : > { %v941_v16 = vpop.f32.mrf.mxu0 }
 0x1e8   : > { %v1302_v17 = vadd.f32 %v1301_v63, %v1213_v13  ;;  %v1030_v18 = vpop.f32.mrf.mxu1 }
 0x1e9   : > { %v1031_v0 = vadd.f32 %v1030_v18, %v941_v16 }
 0x1ea   : > { %v1341_v19 = vadd.f32 %v1302_v17, %v857_v15 }
 0x1ec   : > { %1374 = vst.msk [vmem:[#allocation2 + $0xd8] sm:$0xff] %vm1346_vm7, %v1341_v19 }
 0x1ed   : > { %v1215_v20 = vpop.f32.mrf.mxu2 }
 0x1ee   : > { %v1216_v21 = vadd.f32 %v1215_v20, %v1031_v0  ;;  %v1304_v4 = vpop.f32.mrf.mxu3 }
 0x1ef   : > { %v943_v22 = vpop.f32.mrf.mxu0 }
 0x1f0   : > { %v1305_v23 = vadd.f32 %v1304_v4, %v1216_v21  ;;  %v1032_v24 = vpop.f32.mrf.mxu1 }
 0x1f1   : > { %v1033_v26 = vadd.f32 %v1032_v24, %v943_v22 }
 0x1f2   : > { %v1342_v25 = vadd.f32 %v1305_v23, %v858_v9 }
 0x1f4   : > { %1375 = vst.msk [vmem:[#allocation2 + $0xe0] sm:$0xff] %vm1346_vm7, %v1342_v25 }
 0x1f5   : > { %v1217_v27 = vpop.f32.mrf.mxu2 }
 0x1f6   : > { %v1218_v28 = vadd.f32 %v1217_v27, %v1033_v26  ;;  %v1306_v29 = vpop.f32.mrf.mxu3 }
 0x1f7   : > { %v946_v31 = vpop.f32.mrf.mxu0 }
 0x1f8   : > { %v1307_v32 = vadd.f32 %v1306_v29, %v1218_v28  ;;  %v1035_v33 = vpop.f32.mrf.mxu1 }
 0x1f9   : > { %v1036_v10 = vadd.f32 %v1035_v33, %v946_v31 }
 0x1fa   : > { %v1343_v34 = vadd.f32 %v1307_v32, %v859_v30 }
 0x1fc   : > { %1376 = vst.msk [vmem:[#allocation2 + $0xe8] sm:$0xff] %vm1346_vm7, %v1343_v34 }
 0x1fd   : > { %v1220_v35 = vpop.f32.mrf.mxu2 }
 0x1fe   : > { %v1221_v36 = vadd.f32 %v1220_v35, %v1036_v10  ;;  %v1309_v37 = vpop.f32.mrf.mxu3 }
 0x1ff   : > { %v948_v40 = vpop.f32.mrf.mxu0 }
 0x200   : > { %v1310_v39 = vadd.f32 %v1309_v37, %v1221_v36  ;;  %v1037_v41 = vpop.f32.mrf.mxu1 }
 0x201   : > { %v1038_v43 = vadd.f32 %v1037_v41, %v948_v40 }
 0x202   : > { %v1344_v42 = vadd.f32 %v1310_v39, %v860_v38 }
 0x204   : > { %1377 = vst.msk [vmem:[#allocation2 + $0xf0] sm:$0xff] %vm1346_vm7, %v1344_v42 }
 0x205   : > { %v1222_v44 = vpop.f32.mrf.mxu2 }
 0x206   : > { %v1223_v45 = vadd.f32 %v1222_v44, %v1038_v43  ;;  %v1311_v47 = vpop.f32.mrf.mxu3 }
 0x208   : > { %v1312_v48 = vadd.f32 %v1311_v47, %v1223_v45 }
 0x20a   : > { %v1345_v49 = vadd.f32 %v1312_v48, %v861_v46 }
 0x20c   : > { %1378 = vst.msk [vmem:[#allocation2 + $0xf8] sm:$0xff] %vm1346_vm7, %v1345_v49 }
 0x20d PF: > { %p1765_p6 = scmp.ne.s32.totalorder %s1872_s23, 15 }
 0x20f   : > { %1382 = sbr.rel (%p1765_p6) target bundleno = 565 (0x235), region = 40 }
 0x214   : > { %v1383_v50 = vld [vmem:[#allocation2] sm:$0xff]  ;;  %vm1415_vm4 = vcmask 523264   ;;  %v1384_v51 = vld [vmem:[#allocation2 + $0x8] sm:$0xff]  ;;  %v1385_v52 = vld [vmem:[#allocation2 + $0x10] sm:$0xff] }
 0x215   : > { %1416 = vst.msk [vmem:[%s1968_s11] sm:$0xff] %vm1415_vm4, %v1383_v50  ;;  %v1386_v53 = vld [vmem:[#allocation2 + $0x18] sm:$0xff]  ;;  %v1387_v54 = vld [vmem:[#allocation2 + $0x20] sm:$0xff]  ;;  %v1388_v55 = vld [vmem:[#allocation2 + $0x28] sm:$0xff] }
 0x216   : > { %1417 = vst.msk [vmem:[%s1968_s11 + $0x8] sm:$0xff] %vm1415_vm4, %v1384_v51  ;;  %v1389_v56 = vld [vmem:[#allocation2 + $0x30] sm:$0xff]  ;;  %v1390_v57 = vld [vmem:[#allocation2 + $0x38] sm:$0xff]  ;;  %v1391_v58 = vld [vmem:[#allocation2 + $0x40] sm:$0xff] }
 0x217   : > { %1418 = vst.msk [vmem:[%s1968_s11 + $0x10] sm:$0xff] %vm1415_vm4, %v1385_v52  ;;  %v1392_v59 = vld [vmem:[#allocation2 + $0x48] sm:$0xff]  ;;  %v1393_v60 = vld [vmem:[#allocation2 + $0x50] sm:$0xff]  ;;  %v1394_v61 = vld [vmem:[#allocation2 + $0x58] sm:$0xff] }
 0x218   : > { %1419 = vst.msk [vmem:[%s1968_s11 + $0x18] sm:$0xff] %vm1415_vm4, %v1386_v53  ;;  %v1395_v62 = vld [vmem:[#allocation2 + $0x60] sm:$0xff]  ;;  %v1396_v1 = vld [vmem:[#allocation2 + $0x68] sm:$0xff]  ;;  %v1397_v2 = vld [vmem:[#allocation2 + $0x70] sm:$0xff] }
 0x219   : > { %1420 = vst.msk [vmem:[%s1968_s11 + $0x20] sm:$0xff] %vm1415_vm4, %v1387_v54  ;;  %v1398_v3 = vld [vmem:[#allocation2 + $0x78] sm:$0xff]  ;;  %v1399_v5 = vld [vmem:[#allocation2 + $0x80] sm:$0xff]  ;;  %v1400_v6 = vld [vmem:[#allocation2 + $0x88] sm:$0xff] }
 0x21a   : > { %1421 = vst.msk [vmem:[%s1968_s11 + $0x28] sm:$0xff] %vm1415_vm4, %v1388_v55  ;;  %v1401_v7 = vld [vmem:[#allocation2 + $0x90] sm:$0xff]  ;;  %v1402_v8 = vld [vmem:[#allocation2 + $0x98] sm:$0xff]  ;;  %v1403_v14 = vld [vmem:[#allocation2 + $0xa0] sm:$0xff] }
 0x21b   : > { %1422 = vst.msk [vmem:[%s1968_s11 + $0x30] sm:$0xff] %vm1415_vm4, %v1389_v56  ;;  %v1404_v11 = vld [vmem:[#allocation2 + $0xa8] sm:$0xff]  ;;  %v1405_v12 = vld [vmem:[#allocation2 + $0xb0] sm:$0xff]  ;;  %v1406_v13 = vld [vmem:[#allocation2 + $0xb8] sm:$0xff] }
 0x21c   : > { %1423 = vst.msk [vmem:[%s1968_s11 + $0x38] sm:$0xff] %vm1415_vm4, %v1390_v57  ;;  %v1407_v63 = vld [vmem:[#allocation2 + $0xc0] sm:$0xff]  ;;  %v1408_v15 = vld [vmem:[#allocation2 + $0xc8] sm:$0xff]  ;;  %v1409_v16 = vld [vmem:[#allocation2 + $0xd0] sm:$0xff] }
 0x21d   : > { %1424 = vst.msk [vmem:[%s1968_s11 + $0x40] sm:$0xff] %vm1415_vm4, %v1391_v58  ;;  %v1410_v17 = vld [vmem:[#allocation2 + $0xd8] sm:$0xff]  ;;  %v1411_v18 = vld [vmem:[#allocation2 + $0xe0] sm:$0xff]  ;;  %v1412_v19 = vld [vmem:[#allocation2 + $0xe8] sm:$0xff] }
 0x21e   : > { %1425 = vst.msk [vmem:[%s1968_s11 + $0x48] sm:$0xff] %vm1415_vm4, %v1392_v59  ;;  %v1413_v0 = vld [vmem:[#allocation2 + $0xf0] sm:$0xff]  ;;  %v1414_v20 = vld [vmem:[#allocation2 + $0xf8] sm:$0xff] }
 0x21f   : > { %1426 = vst.msk [vmem:[%s1968_s11 + $0x50] sm:$0xff] %vm1415_vm4, %v1393_v60 }
 0x220   : > { %1427 = vst.msk [vmem:[%s1968_s11 + $0x58] sm:$0xff] %vm1415_vm4, %v1394_v61 }
 0x221   : > { %1428 = vst.msk [vmem:[%s1968_s11 + $0x60] sm:$0xff] %vm1415_vm4, %v1395_v62 }
 0x222   : > { %1429 = vst.msk [vmem:[%s1968_s11 + $0x68] sm:$0xff] %vm1415_vm4, %v1396_v1 }
 0x223   : > { %1430 = vst.msk [vmem:[%s1968_s11 + $0x70] sm:$0xff] %vm1415_vm4, %v1397_v2 }
 0x224   : > { %1431 = vst.msk [vmem:[%s1968_s11 + $0x78] sm:$0xff] %vm1415_vm4, %v1398_v3 }
 0x225   : > { %1432 = vst.msk [vmem:[%s1968_s11 + $0x80] sm:$0xff] %vm1415_vm4, %v1399_v5 }
 0x226   : > { %1433 = vst.msk [vmem:[%s1968_s11 + $0x88] sm:$0xff] %vm1415_vm4, %v1400_v6 }
 0x227   : > { %1434 = vst.msk [vmem:[%s1968_s11 + $0x90] sm:$0xff] %vm1415_vm4, %v1401_v7 }
 0x228   : > { %1435 = vst.msk [vmem:[%s1968_s11 + $0x98] sm:$0xff] %vm1415_vm4, %v1402_v8 }
 0x229   : > { %1436 = vst.msk [vmem:[%s1968_s11 + $0xa0] sm:$0xff] %vm1415_vm4, %v1403_v14 }
 0x22a   : > { %1437 = vst.msk [vmem:[%s1968_s11 + $0xa8] sm:$0xff] %vm1415_vm4, %v1404_v11 }
 0x22b   : > { %1438 = vst.msk [vmem:[%s1968_s11 + $0xb0] sm:$0xff] %vm1415_vm4, %v1405_v12 }
 0x22c   : > { %1439 = vst.msk [vmem:[%s1968_s11 + $0xb8] sm:$0xff] %vm1415_vm4, %v1406_v13 }
 0x22d   : > { %1440 = vst.msk [vmem:[%s1968_s11 + $0xc0] sm:$0xff] %vm1415_vm4, %v1407_v63 }
 0x22e   : > { %1441 = vst.msk [vmem:[%s1968_s11 + $0xc8] sm:$0xff] %vm1415_vm4, %v1408_v15 }
 0x22f   : > { %1442 = vst.msk [vmem:[%s1968_s11 + $0xd0] sm:$0xff] %vm1415_vm4, %v1409_v16 }
 0x230   : > { %1443 = vst.msk [vmem:[%s1968_s11 + $0xd8] sm:$0xff] %vm1415_vm4, %v1410_v17 }
 0x231   : > { %1444 = vst.msk [vmem:[%s1968_s11 + $0xe0] sm:$0xff] %vm1415_vm4, %v1411_v18 }
 0x232   : > { %1445 = vst.msk [vmem:[%s1968_s11 + $0xe8] sm:$0xff] %vm1415_vm4, %v1412_v19 }
 0x233   : > { %1446 = vst.msk [vmem:[%s1968_s11 + $0xf0] sm:$0xff] %vm1415_vm4, %v1413_v0 }
 0x234   : > { %1447 = vst.msk [vmem:[%s1968_s11 + $0xf8] sm:$0xff] %vm1415_vm4, %v1414_v20 }
 0x235 PF: > { %s27_s26 = sadd.s32 1, %s1888_s26   ;;  %s2377_s23 = smov %s1880_s25 }
 0x236   : > { %p24_p7 = scmp.ge.s32.totalorder %s27_s26, 50   ;;  %s2378_s24 = smov %s1884_s0 }
 0x237   : > { %s2379_s25 = smov %s2382_s1  ;;  %s2380_s0 = smov %s2386_s27 }
 0x238   :  { %26 = sbr.rel (!%p24_p7) target bundleno = 10 (0xa), region = 73 }

</bundles_post_ra>
